<compile_context>
chip_gen: v7x
topology: tpu7x:2x2x1
jax: 0.10.0
libtpu: 0.0.40
codegen_flags: <defaults>
</compile_context>

<pallas_src>
import jax
import jax.numpy as jnp
from jax import lax
from jax.experimental import pallas as pl
from jax.experimental.pallas import tpu as pltpu


def _round_up(x, m):
    return ((x + m - 1) // m) * m


def _pick_tm(M, tm_req, min_tm=256):
    """Largest requested lane tile, but (a) multiple of 128, (b) keep the
    grid length >= 2 when M allows so megacore sharding stays effective."""
    tm = min(tm_req, _round_up(M, 128))
    while tm > min_tm and -(-M // tm) < 2:
        tm = max(min_tm, _round_up(tm // 2, 128))
    return max(tm, 128)


# ---------------------------------------------------------------------------
# Pallas kernels
# ---------------------------------------------------------------------------

def _conv_relu_pool_kernel(p_ref, w_ref, b_ref, o_ref):
    """Fused conv (transposed matmul) + bias + 2x2 maxpool + ReLU.

    p_ref : (4, K, TM) bf16  packed im2col patches (one slab per 2x2 pool
                             corner); lanes = pooled output pixels
    w_ref : (Cout, K) bf16   resident weight (torch (Cout,Cin,KH,KW) flat)
    b_ref : (Cout, 1) f32    bias
    o_ref : (Cout, TM)       pooled, ReLU'd activation
    """
    w = w_ref[...]
    # Running max over the four pool-window corners: only ~2 (Cout, TM) f32
    # tiles are live at any time (no vreg spills at large TM).
    m = jnp.dot(w, p_ref[0], preferred_element_type=jnp.float32)
    for c in range(1, 4):
        m = jnp.maximum(
            m, jnp.dot(w, p_ref[c], preferred_element_type=jnp.float32))
    m = m + b_ref[...]
    o_ref[...] = jnp.maximum(m, 0.0).astype(o_ref.dtype)


def conv_relu_pool(patches, w, bias, *, tm=1024, out_dtype=jnp.float32):
    """patches: (4, K, M) packed corner patches. Returns (Cout, M)."""
    _, K, M = patches.shape
    Cout, K2 = w.shape
    assert K == K2
    tm = _pick_tm(M, tm)
    Mp = _round_up(M, tm)
    if Mp != M:
        patches = jnp.pad(patches, ((0, 0), (0, 0), (0, Mp - M)))
    out = pl.pallas_call(
        _conv_relu_pool_kernel,
        out_shape=jax.ShapeDtypeStruct((Cout, Mp), out_dtype),
        grid=(Mp // tm,),
        in_specs=[pl.BlockSpec((4, K, tm), lambda i: (0, 0, i)),   # patches
                  pl.BlockSpec((Cout, K), lambda i: (0, 0)),       # resident W
                  pl.BlockSpec((Cout, 1), lambda i: (0, 0))],      # resident b
        out_specs=pl.BlockSpec((Cout, tm), lambda i: (0, i)),
        compiler_params=pltpu.CompilerParams(
            dimension_semantics=("parallel",),
            vmem_limit_bytes=32 * 1024 * 1024),
    )(patches, w, bias.reshape(Cout, 1))
    return out[:, :M]


def _linear_kernel(x_ref, w_ref, b_ref, o_ref):
    acc = jnp.dot(x_ref[...], w_ref[...], preferred_element_type=jnp.float32)
    o_ref[...] = (acc + b_ref[...]).astype(o_ref.dtype)


def linear(x, w, bias, *, tm=256):
    """(M,K) @ (K,N) + b, rows tiled over the grid, weight resident."""
    M, K = x.shape
    K2, N = w.shape
    assert K == K2
    tm = min(tm, _round_up(M, 8))
    while tm > 8 and -(-M // tm) < 2:       # keep >=2 grid steps if possible
        tm = _round_up(tm // 2, 8)
    Mp = _round_up(M, tm)
    if Mp != M:
        x = jnp.pad(x, ((0, Mp - M), (0, 0)))
    out = pl.pallas_call(
        _linear_kernel,
        out_shape=jax.ShapeDtypeStruct((Mp, N), jnp.float32),
        grid=(Mp // tm,),
        in_specs=[pl.BlockSpec((tm, K), lambda i: (i, 0)),
                  pl.BlockSpec((K, N), lambda i: (0, 0)),
                  pl.BlockSpec((1, N), lambda i: (0, 0))],
        out_specs=pl.BlockSpec((tm, N), lambda i: (i, 0)),
        compiler_params=pltpu.CompilerParams(
            dimension_semantics=("parallel",),
            vmem_limit_bytes=32 * 1024 * 1024),
    )(x, w, bias.reshape(1, N))
    return out[:M]


# ---------------------------------------------------------------------------
# Glue: corner-wise im2col (pure data movement; all math stays in Pallas)
# ---------------------------------------------------------------------------
# TODO(synk): this gather still runs in XLA; fusing it into the conv kernel
# is the remaining (highest-value) optimization.  It now emits bf16 and packs
# all four corners into a single array, halving the expanded HBM traffic and
# the number of DMA streams the kernel pipelines.

def corner_patches(xp, k, ho, wo):
    """xp: (Cin, B, Hp, Wp) spatially padded, channel-major, bf16.

    Returns one (4, Cin*k*k, B*ho*wo) packed patch array: slab c holds the
    im2col patches for pool-window corner (dy, dx).  Row order within a slab
    is (cin, kh, kw), matching torch (Cout, Cin, KH, KW) weights flattened
    to (Cout, Cin*k*k).
    """
    cin, b, _, _ = xp.shape
    h, w = 2 * ho, 2 * wo
    m = b * ho * wo
    corners = []
    for dy in (0, 1):
        for dx in (0, 1):
            taps = []
            for kh in range(k):
                for kw in range(k):
                    s = xp[:, :, kh + dy:kh + dy + h:2, kw + dx:kw + dx + w:2]
                    taps.append(s.reshape(cin, m))        # (Cin, B*ho*wo)
            corners.append(jnp.stack(taps, axis=1).reshape(cin * k * k, m))
    return jnp.stack(corners, axis=0)                     # (4, Cin*k*k, m)


# ---------------------------------------------------------------------------
# Parameters (deterministic synthetic init, torch layouts + kernel layouts)
# ---------------------------------------------------------------------------

def init_torch_params(key):
    k1, k2, k3, k4, k5, k6 = jax.random.split(key, 6)
    return {
        "w1": 0.1 * jax.random.normal(k1, (16, 1, 5, 5), jnp.float32),
        "b1": 0.1 * jax.random.normal(k2, (16,), jnp.float32),
        "w2": 0.05 * jax.random.normal(k3, (32, 16, 5, 5), jnp.float32),
        "b2": 0.1 * jax.random.normal(k4, (32,), jnp.float32),
        "w3": 0.02 * jax.random.normal(k5, (10, 32 * 7 * 7), jnp.float32),
        "b3": 0.1 * jax.random.normal(k6, (10,), jnp.float32),
    }


def to_kernel_params(tp, *, n_pad=128):
    """One-time reorder/cast/pad of torch-layout params into kernel layouts."""
    w3 = jnp.zeros((tp["w3"].shape[1], n_pad), jnp.float32)
    w3 = w3.at[:, :10].set(tp["w3"].T)               # (1568, 128) lane-padded
    b3 = jnp.zeros((n_pad,), jnp.float32).at[:10].set(tp["b3"])
    return {
        "w1": tp["w1"].reshape(16, 1 * 5 * 5).astype(jnp.bfloat16),
        "b1": tp["b1"],                               # bias stays f32
        "w2": tp["w2"].reshape(32, 16 * 5 * 5).astype(jnp.bfloat16),
        "b2": tp["b2"],
        "w3": w3,
        "b3": b3,
    }


# ---------------------------------------------------------------------------
# Forward pass
# ---------------------------------------------------------------------------

def cnn_forward(x_nchw, params):
    B = x_nchw.shape[0]

    # conv1 block: Conv(1->16,k5,p2) + ReLU + MaxPool2 in one fused kernel.
    xp = jnp.pad(x_nchw, ((0, 0), (0, 0), (2, 2), (2, 2)))     # (B,1,32,32)
    xp = jnp.transpose(xp, (1, 0, 2, 3)).astype(jnp.bfloat16)  # (1,B,32,32)
    p1 = corner_patches(xp, 5, 14, 14)                         # (4,25,B*196)
    a1 = conv_relu_pool(p1, params["w1"], params["b1"],
                        tm=2048, out_dtype=jnp.bfloat16)       # (16,B*196) bf16

    # conv2 block: Conv(16->32,k5,p2) + ReLU + MaxPool2 (fused).
    a1 = a1.reshape(16, B, 14, 14)
    a1 = jnp.pad(a1, ((0, 0), (0, 0), (2, 2), (2, 2)))         # (16,B,18,18)
    p2 = corner_patches(a1, 5, 7, 7)                           # (4,400,B*49)
    a2 = conv_relu_pool(p2, params["w2"], params["b2"],
                        tm=1024, out_dtype=jnp.float32)        # (32,B*49) f32

    # Flatten exactly like torch's x.view(B,-1) on the NCHW (B,32,7,7) tensor.
    # feat is itself a returned output, so it must exist in this layout; it is
    # built once and reused for the Linear.
    # TODO(synk): emit (B, 32*49) directly from the conv2 kernel (needs
    # batch-aligned lane tiles) to drop this small XLA transpose.
    feat = a2.reshape(32, B, 49).transpose(1, 0, 2).reshape(B, 32 * 7 * 7)

    # Linear(1568 -> 10); kernel output is 128-lane padded, slice back to 10.
    logits = linear(feat, params["w3"], params["b3"])[:, :10]
    return logits, feat


# Pure-XLA f32 reference of the same PyTorch model (numerical self-check).
def reference_forward(x, tp):
    dn = ("NCHW", "OIHW", "NCHW")
    B = x.shape[0]
    y = lax.conv_general_dilated(x, tp["w1"], (1, 1), ((2, 2), (2, 2)),
                                 dimension_numbers=dn)
    y = jnp.maximum(y + tp["b1"].reshape(1, 16, 1, 1), 0.0)
    y = y.reshape(B, 16, 14, 2, 14, 2).max(axis=(3, 5))
    y = lax.conv_general_dilated(y, tp["w2"], (1, 1), ((2, 2), (2, 2)),
                                 dimension_numbers=dn)
    y = jnp.maximum(y + tp["b2"].reshape(1, 32, 1, 1), 0.0)
    y = y.reshape(B, 32, 7, 2, 7, 2).max(axis=(3, 5))
    feat = y.reshape(B, 32 * 7 * 7)
    logits = feat @ tp["w3"].T + tp["b3"]
    return logits, feat


if __name__ == "__main__":
    key = jax.random.PRNGKey(0)
    k_in, k_par = jax.random.split(key)

    # batch=2, NCHW, 28x28 single channel (implied by Linear(32*7*7, 10)).
    x = jax.random.normal(k_in, (2, 1, 28, 28), jnp.float32)
    tparams = init_torch_params(k_par)
    kparams = to_kernel_params(tparams)

    logits, feat = jax.jit(cnn_forward)(x, kparams)
    jax.block_until_ready((logits, feat))

    assert logits.shape == (2, 10) and logits.dtype == jnp.float32
    assert feat.shape == (2, 32 * 7 * 7) and feat.dtype == jnp.float32

    # Numerical self-check against the pure-f32 XLA reference.  Tolerance is
    # loose enough to absorb the bf16 patch/weight/activation quantization
    # (measured error ~5e-3 here); real structural bugs are O(0.1+).
    ref_logits, ref_feat = jax.jit(reference_forward)(x, tparams)
    jax.block_until_ready((ref_logits, ref_feat))
    assert jnp.allclose(feat, ref_feat, atol=5e-2, rtol=5e-2), \
        float(jnp.max(jnp.abs(feat - ref_feat)))
    assert jnp.allclose(logits, ref_logits, atol=5e-2, rtol=5e-2), \
        float(jnp.max(jnp.abs(logits - ref_logits)))

    print("KERNEL_OK")
</pallas_src>

<mosaic_0001>
module attributes {stable_mosaic.version = 11 : i64} {
  func.func @_conv_relu_pool_kernel(%arg0: i32, %arg1: memref<4x25x256xbf16, #tpu.memory_space<vmem>>, %arg2: memref<16x25xbf16, #tpu.memory_space<vmem>>, %arg3: memref<16x1xf32, #tpu.memory_space<vmem>>, %arg4: memref<16x256xbf16, #tpu.memory_space<vmem>>) attributes {dimension_semantics = [#tpu.dimension_semantics<parallel>], iteration_bounds = array<i64: 2>, scalar_prefetch = 0 : i64, scratch_operands = 0 : i64, tpu.core_type = #tpu.core_type<tc>, window_params = [{transform_indices = @transform_0, window_bounds = array<i64: 4, 25, 256>}, {pipeline_mode = #tpu.pipeline_mode<synchronous>, transform_indices = @transform_1, window_bounds = array<i64: 16, 25>}, {pipeline_mode = #tpu.pipeline_mode<synchronous>, transform_indices = @transform_2, window_bounds = array<i64: 16, 1>}, {transform_indices = @transform_3, window_bounds = array<i64: 16, 256>}]} {
    %c0 = arith.constant 0 : index
    %c0_0 = arith.constant 0 : index
    %0 = vector.load %arg2[%c0, %c0_0] : memref<16x25xbf16, #tpu.memory_space<vmem>>, vector<16x25xbf16>
    %c0_1 = arith.constant 0 : index
    %c0_2 = arith.constant 0 : index
    %c0_3 = arith.constant 0 : index
    %1 = vector.load %arg1[%c0_1, %c0_2, %c0_3] : memref<4x25x256xbf16, #tpu.memory_space<vmem>>, vector<1x25x256xbf16>
    %2 = vector.shape_cast %1 : vector<1x25x256xbf16> to vector<25x256xbf16>
    %cst = arith.constant dense<0.000000e+00> : vector<16x256xf32>
    %3 = tpu.matmul %0, %2, %cst {dimension_numbers = #tpu.dot_dimension_numbers<[1], [0], [0], [1], [0, 0, 1, 1], [], []>} : vector<16x25xbf16>, vector<25x256xbf16>, vector<16x256xf32> -> vector<16x256xf32>
    %c1 = arith.constant 1 : index
    %c0_4 = arith.constant 0 : index
    %c0_5 = arith.constant 0 : index
    %4 = vector.load %arg1[%c1, %c0_4, %c0_5] : memref<4x25x256xbf16, #tpu.memory_space<vmem>>, vector<1x25x256xbf16>
    %5 = vector.shape_cast %4 : vector<1x25x256xbf16> to vector<25x256xbf16>
    %cst_6 = arith.constant dense<0.000000e+00> : vector<16x256xf32>
    %6 = tpu.matmul %0, %5, %cst_6 {dimension_numbers = #tpu.dot_dimension_numbers<[1], [0], [0], [1], [0, 0, 1, 1], [], []>} : vector<16x25xbf16>, vector<25x256xbf16>, vector<16x256xf32> -> vector<16x256xf32>
    %7 = arith.maximumf %3, %6 : vector<16x256xf32>
    %c2 = arith.constant 2 : index
    %c0_7 = arith.constant 0 : index
    %c0_8 = arith.constant 0 : index
    %8 = vector.load %arg1[%c2, %c0_7, %c0_8] : memref<4x25x256xbf16, #tpu.memory_space<vmem>>, vector<1x25x256xbf16>
    %9 = vector.shape_cast %8 : vector<1x25x256xbf16> to vector<25x256xbf16>
    %cst_9 = arith.constant dense<0.000000e+00> : vector<16x256xf32>
    %10 = tpu.matmul %0, %9, %cst_9 {dimension_numbers = #tpu.dot_dimension_numbers<[1], [0], [0], [1], [0, 0, 1, 1], [], []>} : vector<16x25xbf16>, vector<25x256xbf16>, vector<16x256xf32> -> vector<16x256xf32>
    %11 = arith.maximumf %7, %10 : vector<16x256xf32>
    %c3 = arith.constant 3 : index
    %c0_10 = arith.constant 0 : index
    %c0_11 = arith.constant 0 : index
    %12 = vector.load %arg1[%c3, %c0_10, %c0_11] : memref<4x25x256xbf16, #tpu.memory_space<vmem>>, vector<1x25x256xbf16>
    %13 = vector.shape_cast %12 : vector<1x25x256xbf16> to vector<25x256xbf16>
    %cst_12 = arith.constant dense<0.000000e+00> : vector<16x256xf32>
    %14 = tpu.matmul %0, %13, %cst_12 {dimension_numbers = #tpu.dot_dimension_numbers<[1], [0], [0], [1], [0, 0, 1, 1], [], []>} : vector<16x25xbf16>, vector<25x256xbf16>, vector<16x256xf32> -> vector<16x256xf32>
    %15 = arith.maximumf %11, %14 : vector<16x256xf32>
    %c0_13 = arith.constant 0 : index
    %c0_14 = arith.constant 0 : index
    %16 = vector.load %arg3[%c0_13, %c0_14] : memref<16x1xf32, #tpu.memory_space<vmem>>, vector<16x1xf32>
    %17 = vector.broadcast %16 : vector<16x1xf32> to vector<16x256xf32>
    %18 = arith.addf %15, %17 : vector<16x256xf32>
    %cst_15 = arith.constant 0.000000e+00 : f32
    %19 = vector.broadcast %cst_15 : f32 to vector<16x256xf32>
    %20 = arith.maximumf %18, %19 : vector<16x256xf32>
    %21 = arith.truncf %20 : vector<16x256xf32> to vector<16x256xbf16>
    %c0_16 = arith.constant 0 : index
    %c0_17 = arith.constant 0 : index
    %22 = vector.load %arg4[%c0_16, %c0_17] : memref<16x256xbf16, #tpu.memory_space<vmem>>, vector<16x256xbf16>
    tpu.vector_store %arg4[%c0_16, %c0_17], %21 {strides = array<i32>} : memref<16x256xbf16, #tpu.memory_space<vmem>>, vector<16x256xbf16>,
    return
  }
  func.func @transform_0(%arg0: i32) -> (i32, i32, i32) {
    %c0_i32 = arith.constant 0 : i32
    %c0_i32_0 = arith.constant 0 : i32
    %c0_i32_1 = arith.constant 0 : i32
    return %c0_i32, %c0_i32_0, %arg0 : i32, i32, i32
  }
  func.func @transform_1(%arg0: i32) -> (i32, i32) {
    %c0_i32 = arith.constant 0 : i32
    %c0_i32_0 = arith.constant 0 : i32
    %c0_i32_1 = arith.constant 0 : i32
    return %c0_i32, %c0_i32_0 : i32, i32
  }
  func.func @transform_2(%arg0: i32) -> (i32, i32) {
    %c0_i32 = arith.constant 0 : i32
    %c0_i32_0 = arith.constant 0 : i32
    %c0_i32_1 = arith.constant 0 : i32
    return %c0_i32, %c0_i32_0 : i32, i32
  }
  func.func @transform_3(%arg0: i32) -> (i32, i32) {
    %c0_i32 = arith.constant 0 : i32
    %c0_i32_0 = arith.constant 0 : i32
    return %c0_i32, %arg0 : i32, i32
  }
}

module attributes {stable_mosaic.version = 11 : i64} {
  func.func @_conv_relu_pool_kernel(%arg0: i32, %arg1: memref<4x400x128xbf16, #tpu.memory_space<vmem>>, %arg2: memref<32x400xbf16, #tpu.memory_space<vmem>>, %arg3: memref<32x1xf32, #tpu.memory_space<vmem>>, %arg4: memref<32x128xf32, #tpu.memory_space<vmem>>) attributes {dimension_semantics = [#tpu.dimension_semantics<parallel>], iteration_bounds = array<i64: 1>, scalar_prefetch = 0 : i64, scratch_operands = 0 : i64, tpu.core_type = #tpu.core_type<tc>, window_params = [{transform_indices = @transform_0, window_bounds = array<i64: 4, 400, 128>}, {pipeline_mode = #tpu.pipeline_mode<synchronous>, transform_indices = @transform_1, window_bounds = array<i64: 32, 400>}, {pipeline_mode = #tpu.pipeline_mode<synchronous>, transform_indices = @transform_2, window_bounds = array<i64: 32, 1>}, {transform_indices = @transform_3, window_bounds = array<i64: 32, 128>}]} {
    %c0 = arith.constant 0 : index
    %c0_0 = arith.constant 0 : index
    %0 = vector.load %arg2[%c0, %c0_0] : memref<32x400xbf16, #tpu.memory_space<vmem>>, vector<32x400xbf16>
    %c0_1 = arith.constant 0 : index
    %c0_2 = arith.constant 0 : index
    %c0_3 = arith.constant 0 : index
    %1 = vector.load %arg1[%c0_1, %c0_2, %c0_3] : memref<4x400x128xbf16, #tpu.memory_space<vmem>>, vector<1x400x128xbf16>
    %2 = vector.shape_cast %1 : vector<1x400x128xbf16> to vector<400x128xbf16>
    %cst = arith.constant dense<0.000000e+00> : vector<32x128xf32>
    %3 = tpu.matmul %0, %2, %cst {dimension_numbers = #tpu.dot_dimension_numbers<[1], [0], [0], [1], [0, 0, 1, 1], [], []>} : vector<32x400xbf16>, vector<400x128xbf16>, vector<32x128xf32> -> vector<32x128xf32>
    %c1 = arith.constant 1 : index
    %c0_4 = arith.constant 0 : index
    %c0_5 = arith.constant 0 : index
    %4 = vector.load %arg1[%c1, %c0_4, %c0_5] : memref<4x400x128xbf16, #tpu.memory_space<vmem>>, vector<1x400x128xbf16>
    %5 = vector.shape_cast %4 : vector<1x400x128xbf16> to vector<400x128xbf16>
    %cst_6 = arith.constant dense<0.000000e+00> : vector<32x128xf32>
    %6 = tpu.matmul %0, %5, %cst_6 {dimension_numbers = #tpu.dot_dimension_numbers<[1], [0], [0], [1], [0, 0, 1, 1], [], []>} : vector<32x400xbf16>, vector<400x128xbf16>, vector<32x128xf32> -> vector<32x128xf32>
    %7 = arith.maximumf %3, %6 : vector<32x128xf32>
    %c2 = arith.constant 2 : index
    %c0_7 = arith.constant 0 : index
    %c0_8 = arith.constant 0 : index
    %8 = vector.load %arg1[%c2, %c0_7, %c0_8] : memref<4x400x128xbf16, #tpu.memory_space<vmem>>, vector<1x400x128xbf16>
    %9 = vector.shape_cast %8 : vector<1x400x128xbf16> to vector<400x128xbf16>
    %cst_9 = arith.constant dense<0.000000e+00> : vector<32x128xf32>
    %10 = tpu.matmul %0, %9, %cst_9 {dimension_numbers = #tpu.dot_dimension_numbers<[1], [0], [0], [1], [0, 0, 1, 1], [], []>} : vector<32x400xbf16>, vector<400x128xbf16>, vector<32x128xf32> -> vector<32x128xf32>
    %11 = arith.maximumf %7, %10 : vector<32x128xf32>
    %c3 = arith.constant 3 : index
    %c0_10 = arith.constant 0 : index
    %c0_11 = arith.constant 0 : index
    %12 = vector.load %arg1[%c3, %c0_10, %c0_11] : memref<4x400x128xbf16, #tpu.memory_space<vmem>>, vector<1x400x128xbf16>
    %13 = vector.shape_cast %12 : vector<1x400x128xbf16> to vector<400x128xbf16>
    %cst_12 = arith.constant dense<0.000000e+00> : vector<32x128xf32>
    %14 = tpu.matmul %0, %13, %cst_12 {dimension_numbers = #tpu.dot_dimension_numbers<[1], [0], [0], [1], [0, 0, 1, 1], [], []>} : vector<32x400xbf16>, vector<400x128xbf16>, vector<32x128xf32> -> vector<32x128xf32>
    %15 = arith.maximumf %11, %14 : vector<32x128xf32>
    %c0_13 = arith.constant 0 : index
    %c0_14 = arith.constant 0 : index
    %16 = vector.load %arg3[%c0_13, %c0_14] : memref<32x1xf32, #tpu.memory_space<vmem>>, vector<32x1xf32>
    %17 = vector.broadcast %16 : vector<32x1xf32> to vector<32x128xf32>
    %18 = arith.addf %15, %17 : vector<32x128xf32>
    %cst_15 = arith.constant 0.000000e+00 : f32
    %19 = vector.broadcast %cst_15 : f32 to vector<32x128xf32>
    %20 = arith.maximumf %18, %19 : vector<32x128xf32>
    %c0_16 = arith.constant 0 : index
    %c0_17 = arith.constant 0 : index
    %21 = vector.load %arg4[%c0_16, %c0_17] : memref<32x128xf32, #tpu.memory_space<vmem>>, vector<32x128xf32>
    tpu.vector_store %arg4[%c0_16, %c0_17], %20 {strides = array<i32>} : memref<32x128xf32, #tpu.memory_space<vmem>>, vector<32x128xf32>,
    return
  }
  func.func @transform_0(%arg0: i32) -> (i32, i32, i32) {
    %c0_i32 = arith.constant 0 : i32
    %c0_i32_0 = arith.constant 0 : i32
    %c0_i32_1 = arith.constant 0 : i32
    return %c0_i32, %c0_i32_0, %arg0 : i32, i32, i32
  }
  func.func @transform_1(%arg0: i32) -> (i32, i32) {
    %c0_i32 = arith.constant 0 : i32
    %c0_i32_0 = arith.constant 0 : i32
    %c0_i32_1 = arith.constant 0 : i32
    return %c0_i32, %c0_i32_0 : i32, i32
  }
  func.func @transform_2(%arg0: i32) -> (i32, i32) {
    %c0_i32 = arith.constant 0 : i32
    %c0_i32_0 = arith.constant 0 : i32
    %c0_i32_1 = arith.constant 0 : i32
    return %c0_i32, %c0_i32_0 : i32, i32
  }
  func.func @transform_3(%arg0: i32) -> (i32, i32) {
    %c0_i32 = arith.constant 0 : i32
    %c0_i32_0 = arith.constant 0 : i32
    return %c0_i32, %arg0 : i32, i32
  }
}

module attributes {stable_mosaic.version = 11 : i64} {
  func.func @_linear_kernel(%arg0: i32, %arg1: memref<8x1568xf32, #tpu.memory_space<vmem>>, %arg2: memref<1568x128xf32, #tpu.memory_space<vmem>>, %arg3: memref<1x128xf32, #tpu.memory_space<vmem>>, %arg4: memref<8x128xf32, #tpu.memory_space<vmem>>) attributes {dimension_semantics = [#tpu.dimension_semantics<parallel>], iteration_bounds = array<i64: 1>, scalar_prefetch = 0 : i64, scratch_operands = 0 : i64, tpu.core_type = #tpu.core_type<tc>, window_params = [{transform_indices = @transform_0, window_bounds = array<i64: 8, 1568>}, {pipeline_mode = #tpu.pipeline_mode<synchronous>, transform_indices = @transform_1, window_bounds = array<i64: 1568, 128>}, {pipeline_mode = #tpu.pipeline_mode<synchronous>, transform_indices = @transform_2, window_bounds = array<i64: 1, 128>}, {transform_indices = @transform_3, window_bounds = array<i64: 8, 128>}]} {
    %c0 = arith.constant 0 : index
    %c0_0 = arith.constant 0 : index
    %0 = vector.load %arg1[%c0, %c0_0] : memref<8x1568xf32, #tpu.memory_space<vmem>>, vector<8x1568xf32>
    %c0_1 = arith.constant 0 : index
    %c0_2 = arith.constant 0 : index
    %1 = vector.load %arg2[%c0_1, %c0_2] : memref<1568x128xf32, #tpu.memory_space<vmem>>, vector<1568x128xf32>
    %cst = arith.constant dense<0.000000e+00> : vector<8x128xf32>
    %2 = tpu.matmul %0, %1, %cst {dimension_numbers = #tpu.dot_dimension_numbers<[1], [0], [0], [1], [0, 0, 1, 1], [], []>} : vector<8x1568xf32>, vector<1568x128xf32>, vector<8x128xf32> -> vector<8x128xf32>
    %c0_3 = arith.constant 0 : index
    %c0_4 = arith.constant 0 : index
    %3 = vector.load %arg3[%c0_3, %c0_4] : memref<1x128xf32, #tpu.memory_space<vmem>>, vector<1x128xf32>
    %4 = vector.broadcast %3 : vector<1x128xf32> to vector<8x128xf32>
    %5 = arith.addf %2, %4 : vector<8x128xf32>
    %c0_5 = arith.constant 0 : index
    %c0_6 = arith.constant 0 : index
    %6 = vector.load %arg4[%c0_5, %c0_6] : memref<8x128xf32, #tpu.memory_space<vmem>>, vector<8x128xf32>
    tpu.vector_store %arg4[%c0_5, %c0_6], %5 {strides = array<i32>} : memref<8x128xf32, #tpu.memory_space<vmem>>, vector<8x128xf32>,
    return
  }
  func.func @transform_0(%arg0: i32) -> (i32, i32) {
    %c0_i32 = arith.constant 0 : i32
    %c0_i32_0 = arith.constant 0 : i32
    return %arg0, %c0_i32 : i32, i32
  }
  func.func @transform_1(%arg0: i32) -> (i32, i32) {
    %c0_i32 = arith.constant 0 : i32
    %c0_i32_0 = arith.constant 0 : i32
    %c0_i32_1 = arith.constant 0 : i32
    return %c0_i32, %c0_i32_0 : i32, i32
  }
  func.func @transform_2(%arg0: i32) -> (i32, i32) {
    %c0_i32 = arith.constant 0 : i32
    %c0_i32_0 = arith.constant 0 : i32
    %c0_i32_1 = arith.constant 0 : i32
    return %c0_i32, %c0_i32_0 : i32, i32
  }
  func.func @transform_3(%arg0: i32) -> (i32, i32) {
    %c0_i32 = arith.constant 0 : i32
    %c0_i32_0 = arith.constant 0 : i32
    return %arg0, %c0_i32 : i32, i32
  }
}

</mosaic_0001>

<bundles_post_ra>
// kernel: cnn_forward.3
= control target key start
LH: loop header
LB: loop body
LE: loop exit
PB: predicated region body
PF: predicated region fallthrough
CT: control target
= control target key end

     0   :  { %s865_s12 = smov 0   ;;  %s867_s13 = smov 0   ;;  %s978_s0 = inlined_call_operand.vmem [shape: bf16[4,25,512], index: 0, kind: input, shape index: {}]   ;;  %s979_s1 = inlined_call_operand.vmem [shape: bf16[16,25], index: 1, kind: input, shape index: {}]   ;;  %s980_s2 = inlined_call_operand.vmem [shape: f32[16,1], index: 2, kind: input, shape index: {}]   ;;  %s981_s3 = inlined_call_operand.vmem [shape: bf16[16,512], index: 3, kind: output, shape index: {}]  }
   0x1   :  { %s869_s14 = smov 0  }
   0x2 LB: > { %s713_s15 = sadd.s32 4294967295, %s841_s14   ;;  %s882_s16 = sadd.s32 1, %s841_s14   ;;  %s841_s14 = sphi %s869_s14, %s985_s14   ;;  %s837_s13 = sphi %s867_s13, %s984_s13   ;;  %s833_s12 = sphi %s865_s12, %s983_s12  }
   0x3   : > { %s17_s17 = ssub.s32 %s841_s14, %s882_s16  ;;  %s20_s18 = sadd.s32 1, %s837_s13 }
   0x4   : > { %p18_p0 = scmp.eq.s32.totalorder %s17_s17, 0  ;;  %p27_p1 = scmp.ne.s32.totalorder %s837_s13, %s833_s12 }
   0x5   : > { %p28_p2 = scmp.eq.s32.totalorder %s841_s14, 0  ;;  %p99_p3 = scmp.eq.s32.totalorder %s713_s15, 1 }
   0x6   : > { %s893_s19 = scalar_select %p18_p0, %s837_s13, %s20_s18  }
   0x7   : > { %p29_p4 = por %p28_p2, %p27_p1  ;;  %p895_p5 = por %p99_p3, %p27_p1 }
   0x8   : > { %p716_p6 = scmp.ge.s32.totalorder %s841_s14, 2 }
   0xa   : > { %127 = sbr.rel (%p716_p6) target bundleno = 29 (0x1d), region = 24 }
  0x11   : > { %130 = sbr.rel (!%p29_p4) target bundleno = 29 (0x1d), region = 28  ;;  %s132_s21 = sand.u32 (%p29_p4), 1, %s837_s13  }
  0x12   : > { %s763_s22 = sshll.u32 (%p29_p4), %s841_s14, 3  ;;  %s717_s23 = sshll.u32 (%p29_p4), %s132_s21, 7 }
  0x13   : > { %s905_s26 = scalar_lea.vmem (%p29_p4), %s978_s0, %s763_s22  ;;  %s134_s27 = scalar_lea.vmem (%p29_p4), [#allocation2], %s717_s23 }
  0x14   : > { %v195_v0 = vld [vmem:[%s905_s26] sm:$0xff] (%p29_p4)  ;;  %v197_v1 = vld [vmem:[%s905_s26 + $0x10] sm:$0xff] (%p29_p4) }
  0x15   : > { %v199_v2 = vld [vmem:[%s905_s26 + $0x20] sm:$0xff] (%p29_p4)  ;;  %196 = vst [vmem:[%s134_s27] sm:$0xff] (%p29_p4), %v195_v0  ;;  %198 = vst [vmem:[%s134_s27 + $0x8] sm:$0xff] (%p29_p4), %v197_v1  ;;  %v201_v3 = vld [vmem:[%s905_s26 + $0x30] sm:$0xff] (%p29_p4) }
  0x16   : > { %200 = vst [vmem:[%s134_s27 + $0x10] sm:$0xff] (%p29_p4), %v199_v2  ;;  %v203_v4 = vld [vmem:[%s905_s26 + $0x40] sm:$0xff] (%p29_p4)  ;;  %v205_v5 = vld [vmem:[%s905_s26 + $0x50] sm:$0xff] (%p29_p4)  ;;  %202 = vst [vmem:[%s134_s27 + $0x18] sm:$0xff] (%p29_p4), %v201_v3 }
  0x17   : > { %204 = vst [vmem:[%s134_s27 + $0x20] sm:$0xff] (%p29_p4), %v203_v4  ;;  %206 = vst [vmem:[%s134_s27 + $0x28] sm:$0xff] (%p29_p4), %v205_v5  ;;  %v207_v6 = vld [vmem:[%s905_s26 + $0x60] sm:$0xff] (%p29_p4)  ;;  %v209_v7 = vld [vmem:[%s905_s26 + $0x70] sm:$0xff] (%p29_p4) }
  0x18   : > { %v211_v8 = vld [vmem:[%s905_s26 + $0x80] sm:$0xff]  ;;  %208 = vst [vmem:[%s134_s27 + $0x30] sm:$0xff] %v207_v6  ;;  %210 = vst [vmem:[%s134_s27 + $0x38] sm:$0xff] %v209_v7  ;;  %v213_v9 = vld [vmem:[%s905_s26 + $0x90] sm:$0xff] }
  0x19   : > { %212 = vst [vmem:[%s134_s27 + $0x40] sm:$0xff] %v211_v8  ;;  %v215_v10 = vld [vmem:[%s905_s26 + $0xa0] sm:$0xff]  ;;  %v217_v11 = vld [vmem:[%s905_s26 + $0xb0] sm:$0xff]  ;;  %214 = vst [vmem:[%s134_s27 + $0x48] sm:$0xff] %v213_v9 }
  0x1a   : > { %216 = vst [vmem:[%s134_s27 + $0x50] sm:$0xff] %v215_v10  ;;  %218 = vst [vmem:[%s134_s27 + $0x58] sm:$0xff] %v217_v11  ;;  %v219_v12 = vld [vmem:[%s905_s26 + $0xc0] sm:$0xff]  ;;  %v221_v13 = vld [vmem:[%s905_s26 + $0xd0] sm:$0xff] }
  0x1b   : > { %v223_v14 = vld [vmem:[%s905_s26 + $0xe0] sm:$0xff]  ;;  %220 = vst [vmem:[%s134_s27 + $0x60] sm:$0xff] %v219_v12  ;;  %222 = vst [vmem:[%s134_s27 + $0x68] sm:$0xff] %v221_v13  ;;  %v225_v15 = vld [vmem:[%s905_s26 + $0xf0] sm:$0xff] }
  0x1c   : > { %224 = vst [vmem:[%s134_s27 + $0x70] sm:$0xff] %v223_v14  ;;  %226 = vst [vmem:[%s134_s27 + $0x78] sm:$0xff] %v225_v15 }
  0x1d PF: > { %p720_p7 = scmp.ge.s32.totalorder %s841_s14, 1  ;;  %p231_p8 = scmp.lt.s32.totalorder %s841_s14, 3 }
  0x1f   : > { %p232_p9 = pnand %p720_p7, %p231_p8 }
  0x20   : > { %s238_s28 = sand.u32 (!%p232_p9), 1, %s833_s12   ;;  %vm296_vm0 = vcmask (!%p232_p9), 1043456   ;;  %v843_v16 = vmov (!%p232_p9), 0   ;;  %vm297_vm1 = vcmask (!%p232_p9), 1044480   ;;  %v844_v17 = vmov (!%p232_p9), 65535   ;;  %v577_v19 = vld [vmem:[%s980_s2] sm:$0xff] (!%p232_p9) }
  0x21   : > { %235 = sbr.rel (%p232_p9) target bundleno = 286 (0x11e), region = 66  ;;  %s721_s29 = sshll.u32 (!%p232_p9), %s238_s28, 7  ;;  %338 = vmatprep.mubr.bf16.mxu0 (!%p232_p9), %v843_v16  ;;  %410 = vmatprep.mubr.bf16.mxu1 (!%p232_p9), %v843_v16  ;;  %v298_v18 = vsel (!%p232_p9), %vm296_vm0, 4294967295, %v844_v17  ;;  %v578_v21 = vld [vmem:[%s980_s2 + $0x8] sm:$0xff] (!%p232_p9)  ;;  %v806_v32 = vld [vmem:[%s979_s1] sm:$0xff] (!%p232_p9)   ;;  %vm292_vm2 = vcmask (!%p232_p9), 203776  }
  0x22   : > { %793 = vset.pattern.permute.xlu0 (!%p232_p9), %v843_v16  ;;  %s931_s5 = scalar_lea.vmem (!%p232_p9), [#allocation2], %s721_s29  ;;  %v299_v25 = vsel (!%p232_p9), %vm297_vm1, %v298_v18, 0  ;;  %s722_s10 = sshll.u32 (!%p232_p9), %s238_s28, 4 }
  0x23   : > { %v794_v20 = vld [vmem:[%s931_s5 + $0x4] ss:$8 sps:$4 sm:$0xff] (!%p232_p9)   ;;  %581 = vperm.xlu0 (!%p232_p9), %793, %v577_v19   ;;  %v798_v23 = vld [vmem:[%s931_s5] ss:$8 sps:$4 sm:$0xff] (!%p232_p9)   ;;  %s259_s11 = scalar_lea.vmem (!%p232_p9), [#allocation3], %s722_s10 }
  0x24   : > { %v796_v22 = vld [vmem:[%s931_s5 + $0x24] ss:$8 sps:$4 sm:$0xff] (!%p232_p9)   ;;  %306 = vmatprep.subr.bf16.mxu0 (!%p232_p9), %v794_v20  ;;  %v799_v24 = vld [vmem:[%s931_s5 + $0x20] ss:$8 sps:$4 sm:$0xff] (!%p232_p9)  }
  0x25   : > { %378 = vmatprep.subr.bf16.mxu1 (!%p232_p9), %v796_v22  ;;  %v800_v26 = vld [vmem:[%s931_s5 + $0x14] ss:$8 sps:$4 sm:$0x1f] (!%p232_p9)   ;;  %307 = vmatpush1.bf16.msra.mxu0 (!%p232_p9), %v798_v23  ;;  %v804_v29 = vld [vmem:[%s931_s5 + $0x10] ss:$8 sps:$4 sm:$0x1f] (!%p232_p9)  }
  0x26   : > { %379 = vmatpush1.bf16.msra.mxu1 (!%p232_p9), %v799_v24  ;;  %v802_v27 = vld [vmem:[%s931_s5 + $0x34] ss:$8 sps:$4 sm:$0x1f] (!%p232_p9)   ;;  %v304_v28 = vand.u32 (!%p232_p9), %v800_v26, %v299_v25  ;;  %v805_v30 = vld [vmem:[%s931_s5 + $0x30] ss:$8 sps:$4 sm:$0x1f] (!%p232_p9)   ;;  %v301_v34 = vand.u32 (!%p232_p9), %v804_v29, %v299_v25 }
  0x27   : > { %586 = vperm.xlu0 (!%p232_p9), %793, %v578_v21   ;;  %v376_v31 = vand.u32 (!%p232_p9), %v802_v27, %v299_v25  ;;  %v809_v33 = vld [vmem:[%s931_s5 + $0x44] ss:$8 sps:$4 sm:$0xff] (!%p232_p9)   ;;  %v373_v35 = vand.u32 (!%p232_p9), %v805_v30, %v299_v25  ;;  %v807_v36 = vld [vmem:[%s931_s5 + $0x40] ss:$8 sps:$4 sm:$0xff] (!%p232_p9)  }
  0x28   : > { %308 = vmatprep.subr.bf16.mxu0 %v304_v28  ;;  %v810_v37 = vld [vmem:[%s931_s5 + $0x60] ss:$8 sps:$4 sm:$0xff]   ;;  %v812_v38 = vld [vmem:[%s931_s5 + $0x64] ss:$8 sps:$4 sm:$0xff]   ;;  %s766_s17 = sshll.u32 (%p895_p5), %s713_s15, 3 }
  0x29   : > { %380 = vmatprep.subr.bf16.mxu1 %v376_v31  ;;  %309 = vmatpush1.bf16.msra.mxu0 %v301_v34  ;;  %v813_v39 = vld [vmem:[%s931_s5 + $0x50] ss:$8 sps:$4 sm:$0x1f]   ;;  %v815_v40 = vld [vmem:[%s931_s5 + $0x54] ss:$8 sps:$4 sm:$0x1f]   ;;  %s620_s21 = scalar_lea.vmem (%p895_p5), %s981_s3, %s766_s17 }
  0x2a   : > { %381 = vmatpush1.bf16.msra.mxu1 %v373_v35  ;;  %454 = vmatprep.subr.bf16.mxu0 %v809_v33  ;;  %v816_v41 = vld [vmem:[%s931_s5 + $0x70] ss:$8 sps:$4 sm:$0x1f]   ;;  %v452_v42 = vand.u32 %v815_v40, %v299_v25  ;;  %v818_v43 = vld [vmem:[%s931_s5 + $0x74] ss:$8 sps:$4 sm:$0x1f]   ;;  %v449_v45 = vand.u32 %v813_v39, %v299_v25 }
  0x2b   : > { %530 = vmatprep.subr.bf16.mxu1 %v812_v38  ;;  %v528_v44 = vand.u32 %v818_v43, %v299_v25  ;;  %v525_v46 = vand.u32 %v816_v41, %v299_v25 }
  0x2c   : > { %728 = vmatmul.mubr.msk.bf16.vlgmr.msra.gmra.mrb[0].mxu0 %vm292_vm2, %v806_v32 }
  0x2d   : > { %737 = vmatmul.mubr.msk.bf16.vlgmr.msra.gmra.mrb[0].mxu1 %vm292_vm2, %v806_v32  ;;  %455 = vmatpush1.bf16.msra.mxu0 %v807_v36 }
  0x2e   : > { %531 = vmatpush1.bf16.msra.mxu1 %v810_v37  ;;  %456 = vmatprep.subr.bf16.mxu0 %v452_v42 }
  0x2f   : > { %486 = vmatprep.mubr.bf16.mxu0 %v843_v16  ;;  %532 = vmatprep.subr.bf16.mxu1 %v528_v44 }
  0x30   : > { %562 = vmatprep.mubr.bf16.mxu1 %v843_v16 }
  0x31   : > { %457 = vmatpush1.bf16.msra.mxu0 %v449_v45 }
  0x32   : > { %533 = vmatpush1.bf16.msra.mxu1 %v525_v46 }
  0x34   : > { %746 = vmatmul.mubr.msk.bf16.vlgmr.msra.gmra.mrb[4].mxu0 %vm292_vm2, %v806_v32 }
  0x35   : > { %755 = vmatmul.mubr.msk.bf16.vlgmr.msra.gmra.mrb[4].mxu1 %vm292_vm2, %v806_v32 }
  0xa2   : > { %v582_v59 = vpop.permute.xlu0 %581 }
  0xa6   : > { %v587_v14 = vpop.permute.xlu0 %586 }
  0xff   : > { %v340_v47 = vpop.f32.mrb[0].mxu0 }
 0x100   : > { %v412_v48 = vpop.f32.mrb[0].mxu1  ;;  %v342_v50 = vpop.f32.mrb[1].mxu0 }
 0x101   : > { %v421_v49 = vmax.f32 %v340_v47, %v412_v48  ;;  %v414_v51 = vpop.f32.mrb[1].mxu1  ;;  %v344_v53 = vpop.f32.mrb[2].mxu0 }
 0x102   : > { %v422_v52 = vmax.f32 %v342_v50, %v414_v51  ;;  %v416_v54 = vpop.f32.mrb[2].mxu1  ;;  %v346_v56 = vpop.f32.mrb[3].mxu0 }
 0x103   : > { %v423_v55 = vmax.f32 %v344_v53, %v416_v54  ;;  %v418_v57 = vpop.f32.mrb[3].mxu1 }
 0x104   : > { %v424_v58 = vmax.f32 %v346_v56, %v418_v57 }
 0x107   : > { %v488_v60 = vpop.f32.mrb[4].mxu0 }
 0x108   : > { %v564_v61 = vpop.f32.mrb[4].mxu1  ;;  %v497_v62 = vmax.f32 %v421_v49, %v488_v60  ;;  %v490_v63 = vpop.f32.mrb[5].mxu0 }
 0x109   : > { %v566_v0 = vpop.f32.mrb[5].mxu1  ;;  %v498_v1 = vmax.f32 %v422_v52, %v490_v63  ;;  %v492_v2 = vpop.f32.mrb[6].mxu0 }
 0x10a   : > { %v568_v3 = vpop.f32.mrb[6].mxu1  ;;  %v573_v4 = vmax.f32 %v497_v62, %v564_v61  ;;  %v499_v5 = vmax.f32 %v423_v55, %v492_v2  ;;  %v494_v6 = vpop.f32.mrb[7].mxu0 }
 0x10b   : > { %v570_v7 = vpop.f32.mrb[7].mxu1  ;;  %v574_v8 = vmax.f32 %v498_v1, %v566_v0  ;;  %v500_v9 = vmax.f32 %v424_v58, %v494_v6 }
 0x10c   : > { %v589_v10 = vadd.f32 %v582_v59, %v573_v4  ;;  %v575_v11 = vmax.f32 %v499_v5, %v568_v3 }
 0x10d   : > { %v590_v12 = vadd.f32 %v582_v59, %v574_v8  ;;  %v576_v13 = vmax.f32 %v500_v9, %v570_v7 }
 0x10e   : > { %v593_v15 = vmax.f32 %v589_v10, 0.0  ;;  %v591_v16 = vadd.f32 %v587_v14, %v575_v11 }
 0x10f   : > { %v594_v17 = vmax.f32 %v590_v12, 0.0  ;;  %v592_v18 = vadd.f32 %v587_v14, %v576_v13  ;;  %617 = sbr.rel (!%p895_p5) target bundleno = 286 (0x11e), region = 74 }
 0x110   : > { %v595_v19 = vmax.f32 %v591_v16, 0.0 }
 0x111   : > { %v764_v20 = vpack.c.bf16 %v594_v17, %v593_v15  ;;  %v596_v21 = vmax.f32 %v592_v18, 0.0 }
 0x113   : > { %v765_v22 = vpack.c.bf16 %v596_v21, %v595_v19  ;;  %609 = vst [vmem:[%s259_s11] sm:$0xff] %v764_v20 }
 0x115   : > { %610 = vst [vmem:[%s259_s11 + $0x8] sm:$0xff] %v765_v22 }
 0x11a   : > { %v650_v23 = vld [vmem:[%s259_s11] sm:$0xff] }
 0x11b   : > { %651 = vst [vmem:[%s620_s21] sm:$0xff] %v650_v23 }
 0x11c   : > { %v652_v24 = vld [vmem:[%s259_s11 + $0x8] sm:$0xff] }
 0x11d   : > { %653 = vst [vmem:[%s620_s21 + $0x10] sm:$0xff] %v652_v24 }
 0x11e PF: > { %p10_p10 = scmp.ge.s32.totalorder %s882_s16, 4   ;;  %s983_s12 = smov %s837_s13 }
 0x11f   : > { %s984_s13 = smov %s893_s19  ;;  %s985_s14 = smov %s882_s16 }
 0x120   :  { %12 = sbr.rel (!%p10_p10) target bundleno = 2 (0x2), region = 146 }

// kernel: cnn_forward.4
= control target key start
LH: loop header
LB: loop body
LE: loop exit
PB: predicated region body
PF: predicated region fallthrough
CT: control target
= control target key end

     0   :  { %v1808_v0 = vmov 0   ;;  %vm261_vm0 = vcmask 130048   ;;  %s2271_s0 = inlined_call_operand.vmem [shape: bf16[4,400,128], index: 0, kind: input, shape index: {}]   ;;  %s2272_s1 = inlined_call_operand.vmem [shape: bf16[32,400], index: 1, kind: input, shape index: {}]   ;;  %s2273_s2 = inlined_call_operand.vmem [shape: f32[32,1], index: 2, kind: input, shape index: {}]   ;;  %s2274_s3 = inlined_call_operand.vmem [shape: f32[32,128], index: 3, kind: output, shape index: {}]  }
   0x1   :  { %317 = vmatprep.subr.bf16.mxu1 %v1808_v0  ;;  %v1696_v1 = vld [vmem:[%s2271_s0 + $0x40] sm:$0xff]   ;;  %1694 = vset.pattern.permute.xlu0 %v1808_v0  ;;  %v1699_v4 = vld [vmem:[%s2271_s0 + $0x48] sm:$0xff]   ;;  %v1702_v7 = vld [vmem:[%s2271_s0 + $0x50] sm:$0xff]  }
   0x2   :  { %v1697_v2 = vld [vmem:[%s2271_s0 + $0x80] sm:$0xff]   ;;  %1695 = vset.pattern.permute.xlu1 %v1808_v0  ;;  %1581 = vmatprep.subr.bf16.mxu0 %v1696_v1  ;;  %v1700_v5 = vld [vmem:[%s2271_s0 + $0x88] sm:$0xff]   ;;  %v1703_v8 = vld [vmem:[%s2271_s0 + $0x90] sm:$0xff]  }
   0x3   :  { %v1698_v3 = vld [vmem:[%s2271_s0] sm:$0xff]   ;;  %318 = vmatpush1.bf16.msra.mxu1 %v1697_v2  ;;  %v1701_v6 = vld [vmem:[%s2271_s0 + $0x8] sm:$0xff]   ;;  %v1704_v9 = vld [vmem:[%s2271_s0 + $0x10] sm:$0xff]  }
   0x4   :  { %1582 = vmatpush3.bf16.msra.mxu0 %v1698_v3  ;;  %319 = vmatprep.subr.bf16.mxu1 %v1808_v0  ;;  %v1705_v10 = vld [vmem:[%s2271_s0 + $0x58] sm:$0xff]   ;;  %v1708_v13 = vld [vmem:[%s2271_s0 + $0x60] sm:$0xff]   ;;  %v1711_v16 = vld [vmem:[%s2271_s0 + $0x68] sm:$0xff]  }
   0x5   :  { %1583 = vmatprep.subr.bf16.mxu0 %v1699_v4  ;;  %v1706_v11 = vld [vmem:[%s2271_s0 + $0x98] sm:$0xff]   ;;  %v1709_v14 = vld [vmem:[%s2271_s0 + $0xa0] sm:$0xff]   ;;  %v1712_v17 = vld [vmem:[%s2271_s0 + $0xa8] sm:$0xff]  }
   0x6   :  { %v1707_v12 = vld [vmem:[%s2271_s0 + $0x18] sm:$0xff]   ;;  %v1710_v15 = vld [vmem:[%s2271_s0 + $0x20] sm:$0xff]   ;;  %v1713_v18 = vld [vmem:[%s2271_s0 + $0x28] sm:$0xff]  }
   0x7   :  { %320 = vmatpush1.bf16.msra.mxu1 %v1700_v5  ;;  %v1714_v19 = vld [vmem:[%s2271_s0 + $0x70] sm:$0xff]   ;;  %v1717_v23 = vld [vmem:[%s2271_s0 + $0x78] sm:$0xff]   ;;  %v1727_v27 = vld [vmem:[%s2271_s0 + $0x108] sm:$0xff]  }
   0x8   :  { %1584 = vmatpush3.bf16.msra.mxu0 %v1701_v6  ;;  %321 = vmatprep.subr.bf16.mxu1 %v1808_v0  ;;  %v1715_v20 = vld [vmem:[%s2271_s0 + $0xb0] sm:$0xff]   ;;  %v1718_v24 = vld [vmem:[%s2271_s0 + $0xb8] sm:$0xff]   ;;  %v1723_v29 = vld [vmem:[%s2271_s0 + $0xc0] sm:$0xff]  }
   0x9   :  { %1585 = vmatprep.subr.bf16.mxu0 %v1702_v7  ;;  %v1716_v21 = vld [vmem:[%s2271_s0 + $0x30] sm:$0xff]   ;;  %v1916_v25 = vld [vmem:[%s2272_s1 + $0xc] ss:$16 sps:$4 sm:$0xff]   ;;  %v1945_v32 = vld [vmem:[%s2272_s1 + $0x8] ss:$16 sps:$4 sm:$0xff]  }
   0xa   :  { %v1904_v22 = vld [vmem:[%s2272_s1 + $0x4] ss:$16 sps:$4 sm:$0xff]   ;;  %v1719_v26 = vld [vmem:[%s2271_s0 + $0x38] sm:$0xff]   ;;  %1348 = vmatprep.mubr.msk.bf16.mxu1 %vm261_vm0, %v1916_v25  ;;  %v1930_v28 = vld [vmem:[%s2272_s1] ss:$16 sps:$4 sm:$0xff]  }
   0xb   :  { %322 = vmatpush1.bf16.msra.mxu1 %v1703_v8  ;;  %300 = vmatprep.mubr.bf16.mxu0 %v1904_v22  ;;  %v1729_v30 = vld [vmem:[%s2271_s0 + $0xc8] sm:$0xff]   ;;  %v1730_v31 = vld [vmem:[%s2271_s0 + $0x110] sm:$0xff]   ;;  %v1733_v35 = vld [vmem:[%s2271_s0 + $0x118] sm:$0xff]  }
   0xc   :  { %1586 = vmatpush3.bf16.msra.mxu0 %v1704_v9  ;;  %323 = vmatprep.subr.bf16.mxu1 %v1808_v0  ;;  %v1728_v33 = vld [vmem:[%s2271_s0 + $0x148] sm:$0xff]   ;;  %v1732_v34 = vld [vmem:[%s2271_s0 + $0xd0] sm:$0xff]   ;;  %v1735_v37 = vld [vmem:[%s2271_s0 + $0xd8] sm:$0xff]  }
   0xd   :  { %1587 = vmatprep.subr.bf16.mxu0 %v1705_v10  ;;  %v1731_v36 = vld [vmem:[%s2271_s0 + $0x150] sm:$0xff]   ;;  %v1736_v38 = vld [vmem:[%s2271_s0 + $0x120] sm:$0xff]   ;;  %v1734_v39 = vld [vmem:[%s2271_s0 + $0x158] sm:$0xff]  }
   0xe   :  { %v1738_v40 = vld [vmem:[%s2271_s0 + $0xe0] sm:$0xff]   ;;  %v1739_v42 = vld [vmem:[%s2271_s0 + $0x128] sm:$0xff]   ;;  %v1742_v47 = vld [vmem:[%s2271_s0 + $0x130] sm:$0xff]  }
   0xf   :  { %324 = vmatpush1.bf16.msra.mxu1 %v1706_v11  ;;  %v1737_v41 = vld [vmem:[%s2271_s0 + $0x160] sm:$0xff]   ;;  %v1995_v45 = vld [vmem:[%s2272_s1 + $0x2c] ss:$16 sps:$4 sm:$0xff]   ;;  %v2011_v48 = vld [vmem:[%s2272_s1 + $0x28] ss:$16 sps:$4 sm:$0xff]  }
  0x10   :  { %1588 = vmatpush3.bf16.msra.mxu0 %v1707_v12  ;;  %325 = vmatprep.subr.bf16.mxu1 %v1808_v0  ;;  %v1985_v43 = vld [vmem:[%s2272_s1 + $0x24] ss:$16 sps:$4 sm:$0xff]   ;;  %v1990_v44 = vld [vmem:[%s2272_s1 + $0x20] ss:$16 sps:$4 sm:$0xff]   ;;  %v1741_v46 = vld [vmem:[%s2271_s0 + $0xe8] sm:$0xff]  }
  0x11   :  { %1589 = vmatprep.subr.bf16.mxu0 %v1708_v13  ;;  %v1740_v49 = vld [vmem:[%s2271_s0 + $0x168] sm:$0xff]   ;;  %v1744_v50 = vld [vmem:[%s2271_s0 + $0xf0] sm:$0xff]   ;;  %v1750_v51 = vld [vmem:[%s2271_s0 + $0x138] sm:$0xff]  }
  0x12   :  { %v1743_v52 = vld [vmem:[%s2271_s0 + $0x170] sm:$0xff]   ;;  %v1753_v53 = vld [vmem:[%s2271_s0 + $0xf8] sm:$0xff]   ;;  %v1754_v54 = vld [vmem:[%s2271_s0 + $0x140] sm:$0xff]  }
  0x13   :  { %326 = vmatpush1.bf16.msra.mxu1 %v1709_v14  ;;  %v1751_v55 = vld [vmem:[%s2271_s0 + $0x178] sm:$0xff]   ;;  %v1756_v56 = vld [vmem:[%s2271_s0 + $0x100] sm:$0xff]   ;;  %v1758_v57 = vld [vmem:[%s2271_s0 + $0x1d0] sm:$0xff]  }
  0x14   :  { %1590 = vmatpush3.bf16.msra.mxu0 %v1710_v15  ;;  %327 = vmatprep.subr.bf16.mxu1 %v1808_v0  ;;  %v1755_v58 = vld [vmem:[%s2271_s0 + $0x180] sm:$0xff]   ;;  %v1760_v59 = vld [vmem:[%s2271_s0 + $0x190] sm:$0xff]   ;;  %v1761_v60 = vld [vmem:[%s2271_s0 + $0x1d8] sm:$0xff]  }
  0x15   :  { %1591 = vmatprep.subr.bf16.mxu0 %v1711_v16  ;;  %v1757_v61 = vld [vmem:[%s2271_s0 + $0x188] sm:$0xff]   ;;  %v1763_v62 = vld [vmem:[%s2271_s0 + $0x198] sm:$0xff]   ;;  %v1764_v63 = vld [vmem:[%s2271_s0 + $0x1e0] sm:$0xff]  }
  0x16   :  { %v1759_v1 = vld [vmem:[%s2271_s0 + $0x210] sm:$0xff]   ;;  %v1766_v2 = vld [vmem:[%s2271_s0 + $0x1a0] sm:$0xff]   ;;  %v1767_v3 = vld [vmem:[%s2271_s0 + $0x1e8] sm:$0xff]  }
  0x17   :  { %328 = vmatpush1.bf16.msra.mxu1 %v1712_v17  ;;  %v1762_v4 = vld [vmem:[%s2271_s0 + $0x218] sm:$0xff]   ;;  %v1769_v5 = vld [vmem:[%s2271_s0 + $0x1a8] sm:$0xff]   ;;  %v1770_v6 = vld [vmem:[%s2271_s0 + $0x1f0] sm:$0xff]  }
  0x18   :  { %1592 = vmatpush3.bf16.msra.mxu0 %v1713_v18  ;;  %329 = vmatprep.subr.bf16.mxu1 %v1808_v0  ;;  %v1765_v7 = vld [vmem:[%s2271_s0 + $0x220] sm:$0xff]   ;;  %v1772_v8 = vld [vmem:[%s2271_s0 + $0x1b0] sm:$0xff]   ;;  %v1773_v9 = vld [vmem:[%s2271_s0 + $0x1f8] sm:$0xff]  }
  0x19   :  { %1593 = vmatprep.subr.bf16.mxu0 %v1714_v19  ;;  %v1768_v10 = vld [vmem:[%s2271_s0 + $0x228] sm:$0xff]   ;;  %v1775_v11 = vld [vmem:[%s2271_s0 + $0x1b8] sm:$0xff]   ;;  %v1776_v12 = vld [vmem:[%s2271_s0 + $0x200] sm:$0xff]  }
  0x1a   :  { %v1771_v13 = vld [vmem:[%s2271_s0 + $0x230] sm:$0xff]   ;;  %v1778_v14 = vld [vmem:[%s2271_s0 + $0x1c0] sm:$0xff]   ;;  %v1779_v15 = vld [vmem:[%s2271_s0 + $0x208] sm:$0xff]  }
  0x1b   :  { %330 = vmatpush1.bf16.msra.mxu1 %v1715_v20  ;;  %v1774_v16 = vld [vmem:[%s2271_s0 + $0x238] sm:$0xff]   ;;  %v1781_v17 = vld [vmem:[%s2271_s0 + $0x1c8] sm:$0xff]   ;;  %v1777_v19 = vld [vmem:[%s2271_s0 + $0x240] sm:$0xff]  }
  0x1c   :  { %1594 = vmatpush3.bf16.msra.mxu0 %v1716_v21  ;;  %331 = vmatprep.subr.bf16.mxu1 %v1808_v0  ;;  %v1783_v18 = vld [vmem:[%s2271_s0 + $0x298] sm:$0xff]   ;;  %v1786_v21 = vld [vmem:[%s2271_s0 + $0x2a0] sm:$0xff]  }
  0x1d   :  { %1595 = vmatprep.subr.bf16.mxu0 %v1717_v23  ;;  %v1784_v20 = vld [vmem:[%s2271_s0 + $0x258] sm:$0xff]   ;;  %v1780_v23 = vld [vmem:[%s2271_s0 + $0x248] sm:$0xff]  }
  0x1f   :  { %332 = vmatpush1.bf16.msra.mxu1 %v1718_v24  ;;  %v1787_v24 = vld [vmem:[%s2271_s0 + $0x260] sm:$0xff]  }
  0x20   :  { %1596 = vmatpush3.bf16.msra.mxu0 %v1719_v26  ;;  %333 = vmatprep.subr.bf16.mxu1 %v1808_v0  ;;  %v1789_v26 = vld [vmem:[%s2271_s0 + $0x2a8] sm:$0xff]  }
  0x21   :  { %1609 = vmatprep.subr.bf16.mxu0 %v1727_v27  ;;  %v1782_v27 = vld [vmem:[%s2271_s0 + $0x250] sm:$0xff]  }
  0x23   :  { %301 = vmatmul.mubr.bf16.vlgmr.msra.gmra.mrb[0].mxu0 %v1930_v28  ;;  %334 = vmatpush1.bf16.msra.mxu1 %v1723_v29  ;;  %v1790_v29 = vld [vmem:[%s2271_s0 + $0x268] sm:$0xff]  }
  0x24   :  { %616 = vmatprep.subr.bf16.mxu1 %v1808_v0  ;;  %1610 = vmatpush3.bf16.msra.mxu0 %v1729_v30  ;;  %v1275_v30 = vld [vmem:[%s2273_s2] sm:$0xff] }
  0x25   :  { %1611 = vmatprep.subr.bf16.mxu0 %v1730_v31  ;;  %308 = vmatprep.mubr.bf16.mxu0 %v1985_v43  ;;  %v1277_v31 = vld [vmem:[%s2273_s2 + $0x10] sm:$0xff] }
  0x26   :  { %350 = vmatmul.mubr.bf16.vlgmr.msra.gmra.mrb[0].mxu1 %v1945_v32  ;;  %1281 = vperm.xlu0 %1694, %v1275_v30  }
  0x27   :  { %617 = vmatpush1.bf16.msra.mxu1 %v1728_v33  ;;  %1349 = vmatprep.mubr.msk.bf16.mxu1 %vm261_vm0, %v1995_v45  ;;  %v1792_v33 = vld [vmem:[%s2271_s0 + $0x2b0] sm:$0xff]  }
  0x28   :  { %618 = vmatprep.subr.bf16.mxu1 %v1808_v0  ;;  %1612 = vmatpush3.bf16.msra.mxu0 %v1732_v34  ;;  %v1785_v34 = vld [vmem:[%s2271_s0 + $0x2d8] sm:$0xff]  }
  0x29   :  { %1613 = vmatprep.subr.bf16.mxu0 %v1733_v35  ;;  %1291 = vperm.xlu1 %1695, %v1277_v31   ;;  %v1793_v35 = vld [vmem:[%s2271_s0 + $0x270] sm:$0xff]  }
  0x2b   :  { %619 = vmatpush1.bf16.msra.mxu1 %v1731_v36  ;;  %309 = vmatmul.mubr.bf16.gmra.mrb[4].mxu0 %v1990_v44  ;;  %v1276_v36 = vld [vmem:[%s2273_s2 + $0x8] sm:$0xff] }
  0x2c   :  { %620 = vmatprep.subr.bf16.mxu1 %v1808_v0  ;;  %1614 = vmatpush3.bf16.msra.mxu0 %v1735_v37  ;;  %v1795_v37 = vld [vmem:[%s2271_s0 + $0x2b8] sm:$0xff]  }
  0x2d   :  { %1615 = vmatprep.subr.bf16.mxu0 %v1736_v38  ;;  %599 = vmatprep.mubr.bf16.mxu0 %v1904_v22  ;;  %v1278_v38 = vld [vmem:[%s2273_s2 + $0x18] sm:$0xff] }
  0x2e   :  { %358 = vmatmul.mubr.bf16.gmra.mrb[4].mxu1 %v2011_v48  ;;  %1286 = vperm.xlu0 %1694, %v1276_v36  }
  0x2f   :  { %621 = vmatpush1.bf16.msra.mxu1 %v1734_v39  ;;  %1425 = vmatprep.mubr.msk.bf16.mxu1 %vm261_vm0, %v1916_v25  ;;  %v1796_v39 = vld [vmem:[%s2271_s0 + $0x278] sm:$0xff]  }
  0x30   :  { %622 = vmatprep.subr.bf16.mxu1 %v1808_v0  ;;  %1616 = vmatpush3.bf16.msra.mxu0 %v1738_v40  ;;  %v1798_v40 = vld [vmem:[%s2271_s0 + $0x2c0] sm:$0xff]  }
  0x31   :  { %1617 = vmatprep.subr.bf16.mxu0 %v1739_v42  ;;  %1296 = vperm.xlu1 %1695, %v1278_v38   ;;  %v1799_v42 = vld [vmem:[%s2271_s0 + $0x280] sm:$0xff]  }
  0x33   :  { %623 = vmatpush1.bf16.msra.mxu1 %v1737_v41  ;;  %v1791_v41 = vld [vmem:[%s2271_s0 + $0x2e8] sm:$0xff]  }
  0x34   :  { %624 = vmatprep.subr.bf16.mxu1 %v1808_v0  ;;  %1618 = vmatpush3.bf16.msra.mxu0 %v1741_v46  ;;  %v1801_v46 = vld [vmem:[%s2271_s0 + $0x2c8] sm:$0xff]  }
  0x35   :  { %1619 = vmatprep.subr.bf16.mxu0 %v1742_v47  ;;  %v1794_v47 = vld [vmem:[%s2271_s0 + $0x2f0] sm:$0xff]  }
  0x37   :  { %625 = vmatpush1.bf16.msra.mxu1 %v1740_v49  ;;  %v1802_v49 = vld [vmem:[%s2271_s0 + $0x288] sm:$0xff]  }
  0x38   :  { %626 = vmatprep.subr.bf16.mxu1 %v1808_v0  ;;  %1620 = vmatpush3.bf16.msra.mxu0 %v1744_v50  ;;  %v1804_v50 = vld [vmem:[%s2271_s0 + $0x2d0] sm:$0xff]  }
  0x39   :  { %1621 = vmatprep.subr.bf16.mxu0 %v1750_v51  ;;  %v1797_v51 = vld [vmem:[%s2271_s0 + $0x2f8] sm:$0xff]  }
  0x3b   :  { %627 = vmatpush1.bf16.msra.mxu1 %v1743_v52  ;;  %v1800_v52 = vld [vmem:[%s2271_s0 + $0x300] sm:$0xff]  }
  0x3c   :  { %628 = vmatprep.subr.bf16.mxu1 %v1808_v0  ;;  %1622 = vmatpush3.bf16.msra.mxu0 %v1753_v53  ;;  %v1803_v53 = vld [vmem:[%s2271_s0 + $0x308] sm:$0xff]  }
  0x3d   :  { %1623 = vmatprep.subr.bf16.mxu0 %v1754_v54  ;;  %v1806_v54 = vld [vmem:[%s2271_s0 + $0x310] sm:$0xff]  }
  0x3f   :  { %629 = vmatpush1.bf16.msra.mxu1 %v1751_v55  ;;  %v1807_v55 = vld [vmem:[%s2271_s0 + $0x318] sm:$0xff]  }
  0x40   :  { %630 = vmatprep.subr.bf16.mxu1 %v1808_v0  ;;  %1624 = vmatpush3.bf16.msra.mxu0 %v1756_v56 }
  0x41   :  { %1637 = vmatprep.subr.bf16.mxu0 %v1758_v57 }
  0x43   :  { %631 = vmatpush1.bf16.msra.mxu1 %v1755_v58  ;;  %600 = vmatmul.mubr.bf16.vlgmr.msra.gmra.mrb[8].mxu0 %v1930_v28 }
  0x44   :  { %632 = vmatprep.subr.bf16.mxu1 %v1808_v0  ;;  %1638 = vmatpush3.bf16.msra.mxu0 %v1760_v59 }
  0x45   :  { %607 = vmatprep.mubr.bf16.mxu0 %v1985_v43  ;;  %1639 = vmatprep.subr.bf16.mxu0 %v1761_v60 }
  0x47   :  { %633 = vmatpush1.bf16.msra.mxu1 %v1757_v61 }
  0x48   :  { %919 = vmatprep.subr.bf16.mxu1 %v1808_v0  ;;  %1640 = vmatpush3.bf16.msra.mxu0 %v1763_v62 }
  0x49   :  { %1641 = vmatprep.subr.bf16.mxu0 %v1764_v63 }
  0x4a   :  { %649 = vmatmul.mubr.bf16.vlgmr.msra.gmra.mrb[8].mxu1 %v1945_v32 }
  0x4b   :  { %920 = vmatpush1.bf16.msra.mxu1 %v1759_v1  ;;  %608 = vmatmul.mubr.bf16.gmra.mrb[12].mxu0 %v1990_v44 }
  0x4c   :  { %921 = vmatprep.subr.bf16.mxu1 %v1808_v0  ;;  %1426 = vmatprep.mubr.msk.bf16.mxu1 %vm261_vm0, %v1995_v45 }
  0x4d   :  { %1642 = vmatpush3.bf16.msra.mxu0 %v1766_v2  ;;  %902 = vmatprep.mubr.bf16.mxu0 %v1904_v22 }
  0x4e   :  { %1643 = vmatprep.subr.bf16.mxu0 %v1767_v3 }
  0x4f   :  { %922 = vmatpush1.bf16.msra.mxu1 %v1762_v4 }
  0x50   :  { %923 = vmatprep.subr.bf16.mxu1 %v1808_v0 }
  0x51   :  { %1644 = vmatpush3.bf16.msra.mxu0 %v1769_v5 }
  0x52   :  { %657 = vmatmul.mubr.bf16.gmra.mrb[12].mxu1 %v2011_v48  ;;  %1645 = vmatprep.subr.bf16.mxu0 %v1770_v6 }
  0x53   :  { %924 = vmatpush1.bf16.msra.mxu1 %v1765_v7  ;;  %1502 = vmatprep.mubr.msk.bf16.mxu1 %vm261_vm0, %v1916_v25 }
  0x54   :  { %925 = vmatprep.subr.bf16.mxu1 %v1808_v0 }
  0x55   :  { %1646 = vmatpush3.bf16.msra.mxu0 %v1772_v8 }
  0x56   :  { %1647 = vmatprep.subr.bf16.mxu0 %v1773_v9 }
  0x57   :  { %926 = vmatpush1.bf16.msra.mxu1 %v1768_v10 }
  0x58   :  { %927 = vmatprep.subr.bf16.mxu1 %v1808_v0 }
  0x59   :  { %1648 = vmatpush3.bf16.msra.mxu0 %v1775_v11 }
  0x5a   :  { %1649 = vmatprep.subr.bf16.mxu0 %v1776_v12 }
  0x5b   :  { %928 = vmatpush1.bf16.msra.mxu1 %v1771_v13 }
  0x5c   :  { %929 = vmatprep.subr.bf16.mxu1 %v1808_v0 }
  0x5d   :  { %1650 = vmatpush3.bf16.msra.mxu0 %v1778_v14 }
  0x5e   :  { %1651 = vmatprep.subr.bf16.mxu0 %v1779_v15 }
  0x5f   :  { %930 = vmatpush1.bf16.msra.mxu1 %v1774_v16 }
  0x60   :  { %931 = vmatprep.subr.bf16.mxu1 %v1808_v0 }
  0x61   :  { %1652 = vmatpush3.bf16.msra.mxu0 %v1781_v17 }
  0x62   :  { %1665 = vmatprep.subr.bf16.mxu0 %v1783_v18 }
  0x63   :  { %932 = vmatpush1.bf16.msra.mxu1 %v1777_v19 }
  0x64   :  { %933 = vmatprep.subr.bf16.mxu1 %v1808_v0  ;;  %903 = vmatmul.mubr.bf16.vlgmr.msra.gmra.mrb[16].mxu0 %v1930_v28 }
  0x65   :  { %1666 = vmatpush3.bf16.msra.mxu0 %v1784_v20  ;;  %910 = vmatprep.mubr.bf16.mxu0 %v1985_v43 }
  0x66   :  { %1667 = vmatprep.subr.bf16.mxu0 %v1786_v21 }
  0x67   :  { %934 = vmatpush1.bf16.msra.mxu1 %v1780_v23 }
  0x68   :  { %935 = vmatprep.subr.bf16.mxu1 %v1808_v0 }
  0x69   :  { %1668 = vmatpush3.bf16.msra.mxu0 %v1787_v24 }
  0x6a   :  { %1669 = vmatprep.subr.bf16.mxu0 %v1789_v26 }
  0x6b   :  { %936 = vmatpush1.bf16.msra.mxu1 %v1782_v27 }
  0x6c   :  { %1222 = vmatprep.subr.bf16.mxu1 %v1808_v0  ;;  %911 = vmatmul.mubr.bf16.gmra.mrb[20].mxu0 %v1990_v44 }
  0x6d   :  { %1670 = vmatpush3.bf16.msra.mxu0 %v1790_v29  ;;  %1205 = vmatprep.mubr.bf16.mxu0 %v1904_v22  ;;  %v1788_v22 = vld [vmem:[%s2271_s0 + $0x2e0] sm:$0xff]  }
  0x6e   :  { %952 = vmatmul.mubr.bf16.vlgmr.msra.gmra.mrb[16].mxu1 %v1945_v32  ;;  %1671 = vmatprep.subr.bf16.mxu0 %v1792_v33 }
  0x6f   :  { %1223 = vmatpush1.bf16.msra.mxu1 %v1785_v34  ;;  %1503 = vmatprep.mubr.msk.bf16.mxu1 %vm261_vm0, %v1995_v45 }
  0x70   :  { %1224 = vmatprep.subr.bf16.mxu1 %v1808_v0 }
  0x71   :  { %1672 = vmatpush3.bf16.msra.mxu0 %v1793_v35 }
  0x72   :  { %1673 = vmatprep.subr.bf16.mxu0 %v1795_v37 }
  0x73   :  { %1225 = vmatpush1.bf16.msra.mxu1 %v1788_v22 }
  0x74   :  { %1226 = vmatprep.subr.bf16.mxu1 %v1808_v0 }
  0x75   :  { %1674 = vmatpush3.bf16.msra.mxu0 %v1796_v39 }
  0x76   :  { %960 = vmatmul.mubr.bf16.gmra.mrb[20].mxu1 %v2011_v48  ;;  %1675 = vmatprep.subr.bf16.mxu0 %v1798_v40 }
  0x77   :  { %1227 = vmatpush1.bf16.msra.mxu1 %v1791_v41  ;;  %1579 = vmatprep.mubr.msk.bf16.mxu1 %vm261_vm0, %v1916_v25  ;;  %v1805_v25 = vld [vmem:[%s2271_s0 + $0x290] sm:$0xff]  }
  0x78   :  { %1228 = vmatprep.subr.bf16.mxu1 %v1808_v0 }
  0x79   :  { %1676 = vmatpush3.bf16.msra.mxu0 %v1799_v42 }
  0x7a   :  { %1677 = vmatprep.subr.bf16.mxu0 %v1801_v46 }
  0x7b   :  { %1229 = vmatpush1.bf16.msra.mxu1 %v1794_v47 }
  0x7c   :  { %1230 = vmatprep.subr.bf16.mxu1 %v1808_v0 }
  0x7d   :  { %1678 = vmatpush3.bf16.msra.mxu0 %v1802_v49 }
  0x7e   :  { %1679 = vmatprep.subr.bf16.mxu0 %v1804_v50 }
  0x7f   :  { %1231 = vmatpush1.bf16.msra.mxu1 %v1797_v51 }
  0x80   :  { %1232 = vmatprep.subr.bf16.mxu1 %v1808_v0 }
  0x81   :  { %1680 = vmatpush3.bf16.msra.mxu0 %v1805_v25 }
  0x83   :  { %1233 = vmatpush1.bf16.msra.mxu1 %v1800_v52 }
  0x84   :  { %1234 = vmatprep.subr.bf16.mxu1 %v1808_v0  ;;  %1206 = vmatmul.mubr.bf16.vlgmr.msra.gmra.mrb[24].mxu0 %v1930_v28 }
  0x85   :  { %1213 = vmatprep.mubr.bf16.mxu0 %v1985_v43 }
  0x87   :  { %1235 = vmatpush1.bf16.msra.mxu1 %v1803_v53 }
  0x88   :  { %1236 = vmatprep.subr.bf16.mxu1 %v1808_v0 }
  0x8b   :  { %1237 = vmatpush1.bf16.msra.mxu1 %v1806_v54 }
  0x8c   :  { %1238 = vmatprep.subr.bf16.mxu1 %v1808_v0  ;;  %1214 = vmatmul.mubr.bf16.gmra.mrb[28].mxu0 %v1990_v44 }
  0x8f   :  { %1239 = vmatpush1.bf16.msra.mxu1 %v1807_v55 }
  0x92   :  { %1255 = vmatmul.mubr.bf16.vlgmr.msra.gmra.mrb[24].mxu1 %v1945_v32 }
  0x93   :  { %1580 = vmatprep.mubr.msk.bf16.mxu1 %vm261_vm0, %v1995_v45 }
  0x9a   :  { %1263 = vmatmul.mubr.bf16.gmra.mrb[28].mxu1 %v2011_v48 }
  0xf6   :  { %v1597_v28 = vpop.f32.mrb[0].mxu0 }
  0xf7   :  { %v1598_v43 = vpop.f32.mrb[1].mxu0 }
  0xf8   :  { %v1599_v56 = vadd.f32 %v1598_v43, %v1597_v28  ;;  %v1600_v57 = vpop.f32.mrb[2].mxu0 }
  0xf9   :  { %v1601_v58 = vpop.f32.mrb[3].mxu0  ;;  %v351_v59 = vpop.f32.mrb[0].mxu1 }
  0xfa   :  { %v1602_v60 = vadd.f32 %v1601_v58, %v1600_v57  ;;  %v352_v61 = vadd.f32 %v1599_v56, %v351_v59  ;;  %v353_v62 = vpop.f32.mrb[1].mxu1 }
  0xfb   :  { %v354_v0 = vpop.f32.mrb[2].mxu1 }
  0xfc   :  { %v355_v63 = vadd.f32 %v1602_v60, %v354_v0  ;;  %v356_v44 = vpop.f32.mrb[3].mxu1 }
  0xfe   :  { %v1603_v1 = vpop.f32.mrb[4].mxu0 }
  0xff   :  { %v1604_v2 = vpop.f32.mrb[5].mxu0 }
 0x100   :  { %v1605_v32 = vadd.f32 %v1604_v2, %v1603_v1  ;;  %v1606_v3 = vpop.f32.mrb[6].mxu0 }
 0x101   :  { %v359_v4 = vpop.f32.mrb[4].mxu1  ;;  %v1607_v45 = vpop.f32.mrb[7].mxu0 }
 0x102   :  { %v360_v5 = vadd.f32 %v1605_v32, %v359_v4  ;;  %v1608_v48 = vadd.f32 %v1607_v45, %v1606_v3  ;;  %v361_v6 = vpop.f32.mrb[5].mxu1 }
 0x103   :  { %v362_v7 = vpop.f32.mrb[6].mxu1 }
 0x104   :  { %v363_v8 = vadd.f32 %v1608_v48, %v362_v7  ;;  %v364_v9 = vpop.f32.mrb[7].mxu1 }
 0x116   :  { %v1625_v10 = vpop.f32.mrb[8].mxu0 }
 0x117   :  { %v1626_v11 = vpop.f32.mrb[9].mxu0 }
 0x118   :  { %v1627_v12 = vadd.f32 %v1626_v11, %v1625_v10  ;;  %v1628_v13 = vpop.f32.mrb[10].mxu0 }
 0x119   :  { %v1629_v14 = vpop.f32.mrb[11].mxu0 }
 0x11a   :  { %v1630_v15 = vadd.f32 %v1629_v14, %v1628_v13  ;;  %v1282_v13 = vpop.permute.xlu0 %1281 }
 0x11d   :  { %v650_v16 = vpop.f32.mrb[8].mxu1 }
 0x11e   :  { %v651_v17 = vadd.f32 %v1627_v12, %v650_v16  ;;  %v652_v18 = vpop.f32.mrb[9].mxu1  ;;  %v1631_v19 = vpop.f32.mrb[12].mxu0 }
 0x11f   :  { %v653_v20 = vpop.f32.mrb[10].mxu1  ;;  %v1632_v21 = vpop.f32.mrb[13].mxu0 }
 0x120   :  { %v665_v23 = vmax.f32 %v352_v61, %v651_v17  ;;  %v654_v24 = vadd.f32 %v1630_v15, %v653_v20  ;;  %v655_v26 = vpop.f32.mrb[11].mxu1  ;;  %v1633_v27 = vadd.f32 %v1632_v21, %v1631_v19  ;;  %v1634_v29 = vpop.f32.mrb[14].mxu0 }
 0x121   :  { %v1635_v30 = vpop.f32.mrb[15].mxu0 }
 0x122   :  { %v666_v31 = vmax.f32 %v355_v63, %v654_v24  ;;  %v1636_v33 = vadd.f32 %v1635_v30, %v1634_v29  ;;  %v1292_v30 = vpop.permute.xlu1 %1291 }
 0x125   :  { %v658_v34 = vpop.f32.mrb[12].mxu1 }
 0x126   :  { %v659_v35 = vadd.f32 %v1633_v27, %v658_v34  ;;  %v660_v36 = vpop.f32.mrb[13].mxu1 }
 0x127   :  { %v661_v37 = vpop.f32.mrb[14].mxu1 }
 0x128   :  { %v667_v38 = vmax.f32 %v360_v5, %v659_v35  ;;  %v662_v22 = vadd.f32 %v1636_v33, %v661_v37  ;;  %v663_v39 = vpop.f32.mrb[15].mxu1 }
 0x12a   :  { %v668_v40 = vmax.f32 %v363_v8, %v662_v22 }
 0x137   :  { %v1653_v41 = vpop.f32.mrb[16].mxu0 }
 0x138   :  { %v1654_v42 = vpop.f32.mrb[17].mxu0 }
 0x139   :  { %v1655_v46 = vadd.f32 %v1654_v42, %v1653_v41  ;;  %v1656_v47 = vpop.f32.mrb[18].mxu0  ;;  %v1297_v41 = vpop.permute.xlu1 %1296 }
 0x13a   :  { %v1657_v49 = vpop.f32.mrb[19].mxu0 }
 0x13b   :  { %v1658_v50 = vadd.f32 %v1657_v49, %v1656_v47 }
 0x13f   :  { %v1659_v51 = vpop.f32.mrb[20].mxu0 }
 0x140   :  { %v1660_v25 = vpop.f32.mrb[21].mxu0 }
 0x141   :  { %v953_v52 = vpop.f32.mrb[16].mxu1  ;;  %v1661_v53 = vadd.f32 %v1660_v25, %v1659_v51  ;;  %v1662_v54 = vpop.f32.mrb[22].mxu0 }
 0x142   :  { %v954_v55 = vadd.f32 %v1655_v46, %v953_v52  ;;  %v955_v28 = vpop.f32.mrb[17].mxu1  ;;  %v1663_v43 = vpop.f32.mrb[23].mxu0 }
 0x143   :  { %v956_v56 = vpop.f32.mrb[18].mxu1  ;;  %v1664_v57 = vadd.f32 %v1663_v43, %v1662_v54 }
 0x144   :  { %v968_v58 = vmax.f32 %v665_v23, %v954_v55  ;;  %v957_v59 = vadd.f32 %v1658_v50, %v956_v56  ;;  %v958_v60 = vpop.f32.mrb[19].mxu1  ;;  %v1287_v23 = vpop.permute.xlu0 %1286 }
 0x146   :  { %v969_v61 = vmax.f32 %v666_v31, %v957_v59 }
 0x149   :  { %v961_v62 = vpop.f32.mrb[20].mxu1 }
 0x14a   :  { %v962_v0 = vadd.f32 %v1661_v53, %v961_v62  ;;  %v963_v63 = vpop.f32.mrb[21].mxu1 }
 0x14b   :  { %v964_v44 = vpop.f32.mrb[22].mxu1 }
 0x14c   :  { %v970_v1 = vmax.f32 %v667_v38, %v962_v0  ;;  %v965_v2 = vadd.f32 %v1664_v57, %v964_v44  ;;  %v966_v32 = vpop.f32.mrb[23].mxu1 }
 0x14e   :  { %v971_v3 = vmax.f32 %v668_v40, %v965_v2 }
 0x157   :  { %v1681_v4 = vpop.f32.mrb[24].mxu0 }
 0x158   :  { %v1682_v45 = vpop.f32.mrb[25].mxu0 }
 0x159   :  { %v1683_v5 = vadd.f32 %v1682_v45, %v1681_v4  ;;  %v1684_v48 = vpop.f32.mrb[26].mxu0 }
 0x15a   :  { %v1685_v6 = vpop.f32.mrb[27].mxu0 }
 0x15b   :  { %v1686_v7 = vadd.f32 %v1685_v6, %v1684_v48 }
 0x15f   :  { %v1687_v8 = vpop.f32.mrb[28].mxu0 }
 0x160   :  { %v1688_v9 = vpop.f32.mrb[29].mxu0 }
 0x161   :  { %v1689_v10 = vadd.f32 %v1688_v9, %v1687_v8  ;;  %v1690_v11 = vpop.f32.mrb[30].mxu0 }
 0x162   :  { %v1691_v12 = vpop.f32.mrb[31].mxu0 }
 0x163   :  { %v1692_v14 = vadd.f32 %v1691_v12, %v1690_v11 }
 0x165   :  { %v1256_v15 = vpop.f32.mrb[24].mxu1 }
 0x166   :  { %v1257_v16 = vadd.f32 %v1683_v5, %v1256_v15  ;;  %v1258_v17 = vpop.f32.mrb[25].mxu1 }
 0x167   :  { %v1259_v18 = vpop.f32.mrb[26].mxu1 }
 0x168   :  { %v1271_v19 = vmax.f32 %v968_v58, %v1257_v16  ;;  %v1260_v20 = vadd.f32 %v1686_v7, %v1259_v18  ;;  %v1261_v21 = vpop.f32.mrb[27].mxu1 }
 0x16a   :  { %v1299_v24 = vadd.f32 %v1282_v13, %v1271_v19  ;;  %v1272_v26 = vmax.f32 %v969_v61, %v1260_v20 }
 0x16c   :  { %v1303_v27 = vmax.f32 %v1299_v24, 0.0  ;;  %v1300_v29 = vadd.f32 %v1287_v23, %v1272_v26 }
 0x16d   :  { %v1264_v31 = vpop.f32.mrb[28].mxu1 }
 0x16e   :  { %1307 = vst [vmem:[%s2274_s3] sm:$0xff] %v1303_v27  ;;  %v1304_v33 = vmax.f32 %v1300_v29, 0.0  ;;  %v1265_v34 = vadd.f32 %v1689_v10, %v1264_v31  ;;  %v1266_v35 = vpop.f32.mrb[29].mxu1 }
 0x16f   :  { %v1267_v36 = vpop.f32.mrb[30].mxu1 }
 0x170   :  { %1308 = vst [vmem:[%s2274_s3 + $0x8] sm:$0xff] %v1304_v33  ;;  %v1273_v37 = vmax.f32 %v970_v1, %v1265_v34  ;;  %v1268_v38 = vadd.f32 %v1692_v14, %v1267_v36  ;;  %v1269_v22 = vpop.f32.mrb[31].mxu1 }
 0x172   :  { %v1301_v39 = vadd.f32 %v1292_v30, %v1273_v37  ;;  %v1274_v40 = vmax.f32 %v971_v3, %v1268_v38 }
 0x174   :  { %v1305_v42 = vmax.f32 %v1301_v39, 0.0  ;;  %v1302_v46 = vadd.f32 %v1297_v41, %v1274_v40 }
 0x176   :  { %1309 = vst [vmem:[%s2274_s3 + $0x10] sm:$0xff] %v1305_v42  ;;  %v1306_v47 = vmax.f32 %v1302_v46, 0.0 }
 0x178   :  { %1310 = vst [vmem:[%s2274_s3 + $0x18] sm:$0xff] %v1306_v47 }

// kernel: cnn_forward.5
= control target key start
LH: loop header
LB: loop body
LE: loop exit
PB: predicated region body
PF: predicated region fallthrough
CT: control target
= control target key end

     0   :  { %vm1159_vm0 = vmmov 0   ;;  %vm230_vm1 = vcmask 261120   ;;  %s1814_s1 = inlined_call_operand.vmem [shape: f32[1568,128], index: 1, kind: input, shape index: {}]   ;;  %s1815_s0 = inlined_call_operand.vmem [shape: f32[8,1568], index: 0, kind: input, shape index: {}]   ;;  %s1816_s2 = inlined_call_operand.vmem [shape: f32[1,128], index: 2, kind: input, shape index: {}]   ;;  %s1817_s3 = inlined_call_operand.vmem [shape: f32[8,128], index: 3, kind: output, shape index: {}]  }
   0x1   :  { %v43_v0 = vld [vmem:[%s1814_s1 + $0x80] sm:$0xff]  ;;  %v44_v1 = vld [vmem:[%s1814_s1 + $0x88] sm:$0xff]  ;;  %v45_v11 = vld [vmem:[%s1814_s1 + $0x90] sm:$0xff] }
   0x2   :  { %v27_v2 = vld [vmem:[%s1814_s1] sm:$0xff]  ;;  %v957_v3 = vpack.c.bf16 %v44_v1, %v43_v0  ;;  %v28_v4 = vld [vmem:[%s1814_s1 + $0x8] sm:$0xff]  ;;  %v46_v13 = vld [vmem:[%s1814_s1 + $0x98] sm:$0xff] }
   0x3   :  { %v75_v5 = vld [vmem:[%s1814_s1 + $0x180] sm:$0xff]  ;;  %v76_v6 = vld [vmem:[%s1814_s1 + $0x188] sm:$0xff]  ;;  %v959_v7 = vpack.c.bf16 %v28_v4, %v27_v2  ;;  %v29_v14 = vld [vmem:[%s1814_s1 + $0x10] sm:$0xff]  ;;  %v961_v16 = vpack.c.bf16 %v46_v13, %v45_v11 }
   0x4   :  { %v989_v8 = vpack.c.bf16 %v76_v6, %v75_v5  ;;  %v59_v9 = vld [vmem:[%s1814_s1 + $0x100] sm:$0xff]  ;;  %v60_v10 = vld [vmem:[%s1814_s1 + $0x108] sm:$0xff]  ;;  %958 = vmatprep.subr.bf16.mxu0 %v957_v3  ;;  %v30_v15 = vld [vmem:[%s1814_s1 + $0x18] sm:$0xff] }
   0x5   :  { %v991_v12 = vpack.c.bf16 %v60_v10, %v59_v9  ;;  %960 = vmatpush3.bf16.msra.mxu0 %v959_v7  ;;  %v963_v17 = vpack.c.bf16 %v30_v15, %v29_v14  ;;  %v77_v18 = vld [vmem:[%s1814_s1 + $0x190] sm:$0xff]  ;;  %v78_v19 = vld [vmem:[%s1814_s1 + $0x198] sm:$0xff]  ;;  %v47_v23 = vld [vmem:[%s1814_s1 + $0xa0] sm:$0xff] }
   0x6   :  { %990 = vmatprep.subr.bf16.mxu1 %v989_v8  ;;  %v61_v20 = vld [vmem:[%s1814_s1 + $0x110] sm:$0xff]  ;;  %v993_v21 = vpack.c.bf16 %v78_v19, %v77_v18  ;;  %v62_v22 = vld [vmem:[%s1814_s1 + $0x118] sm:$0xff]  ;;  %v48_v24 = vld [vmem:[%s1814_s1 + $0xa8] sm:$0xff]  ;;  %962 = vmatprep.subr.bf16.mxu0 %v961_v16 }
   0x7   :  { %992 = vmatpush3.bf16.msra.mxu1 %v991_v12  ;;  %v995_v25 = vpack.c.bf16 %v62_v22, %v61_v20  ;;  %v965_v26 = vpack.c.bf16 %v48_v24, %v47_v23  ;;  %v31_v27 = vld [vmem:[%s1814_s1 + $0x20] sm:$0xff]  ;;  %v32_v28 = vld [vmem:[%s1814_s1 + $0x28] sm:$0xff]  ;;  %v49_v35 = vld [vmem:[%s1814_s1 + $0xb0] sm:$0xff] }
   0x8   :  { %v79_v29 = vld [vmem:[%s1814_s1 + $0x1a0] sm:$0xff]  ;;  %994 = vmatprep.subr.bf16.mxu1 %v993_v21  ;;  %v80_v30 = vld [vmem:[%s1814_s1 + $0x1a8] sm:$0xff]  ;;  %v967_v33 = vpack.c.bf16 %v32_v28, %v31_v27  ;;  %v50_v36 = vld [vmem:[%s1814_s1 + $0xb8] sm:$0xff] }
   0x9   :  { %v63_v31 = vld [vmem:[%s1814_s1 + $0x120] sm:$0xff]  ;;  %v64_v32 = vld [vmem:[%s1814_s1 + $0x128] sm:$0xff]  ;;  %964 = vmatpush3.bf16.msra.mxu0 %v963_v17  ;;  %v997_v34 = vpack.c.bf16 %v80_v30, %v79_v29  ;;  %v33_v37 = vld [vmem:[%s1814_s1 + $0x30] sm:$0xff]  ;;  %v969_v39 = vpack.c.bf16 %v50_v36, %v49_v35 }
   0xa   :  { %966 = vmatprep.subr.bf16.mxu0 %v965_v26  ;;  %v999_v38 = vpack.c.bf16 %v64_v32, %v63_v31  ;;  %v34_v40 = vld [vmem:[%s1814_s1 + $0x38] sm:$0xff]  ;;  %v81_v41 = vld [vmem:[%s1814_s1 + $0x1b0] sm:$0xff]  ;;  %v51_v46 = vld [vmem:[%s1814_s1 + $0xc0] sm:$0xff] }
   0xb   :  { %996 = vmatpush3.bf16.msra.mxu1 %v995_v25  ;;  %v82_v42 = vld [vmem:[%s1814_s1 + $0x1b8] sm:$0xff]  ;;  %v65_v44 = vld [vmem:[%s1814_s1 + $0x130] sm:$0xff]  ;;  %v52_v47 = vld [vmem:[%s1814_s1 + $0xc8] sm:$0xff]  ;;  %v971_v48 = vpack.c.bf16 %v34_v40, %v33_v37 }
   0xc   :  { %998 = vmatprep.subr.bf16.mxu1 %v997_v34  ;;  %v1001_v43 = vpack.c.bf16 %v82_v42, %v81_v41  ;;  %v66_v45 = vld [vmem:[%s1814_s1 + $0x138] sm:$0xff]  ;;  %v83_v49 = vld [vmem:[%s1814_s1 + $0x1c0] sm:$0xff]  ;;  %v84_v50 = vld [vmem:[%s1814_s1 + $0x1c8] sm:$0xff]  ;;  %v973_v52 = vpack.c.bf16 %v52_v47, %v51_v46 }
   0xd   :  { %968 = vmatpush3.bf16.msra.mxu0 %v967_v33  ;;  %v1003_v51 = vpack.c.bf16 %v66_v45, %v65_v44  ;;  %v35_v53 = vld [vmem:[%s1814_s1 + $0x40] sm:$0xff]  ;;  %v36_v54 = vld [vmem:[%s1814_s1 + $0x48] sm:$0xff]  ;;  %v1005_v56 = vpack.c.bf16 %v84_v50, %v83_v49  ;;  %v53_v58 = vld [vmem:[%s1814_s1 + $0xd0] sm:$0xff] }
   0xe   :  { %970 = vmatprep.subr.bf16.mxu0 %v969_v39  ;;  %v67_v55 = vld [vmem:[%s1814_s1 + $0x140] sm:$0xff]  ;;  %v68_v57 = vld [vmem:[%s1814_s1 + $0x148] sm:$0xff]  ;;  %v54_v59 = vld [vmem:[%s1814_s1 + $0xd8] sm:$0xff]  ;;  %v975_v62 = vpack.c.bf16 %v36_v54, %v35_v53 }
   0xf   :  { %1000 = vmatpush3.bf16.msra.mxu1 %v999_v38  ;;  %v85_v60 = vld [vmem:[%s1814_s1 + $0x1d0] sm:$0xff]  ;;  %v86_v61 = vld [vmem:[%s1814_s1 + $0x1d8] sm:$0xff]  ;;  %v1007_v63 = vpack.c.bf16 %v68_v57, %v67_v55  ;;  %v977_v0 = vpack.c.bf16 %v54_v59, %v53_v58  ;;  %v55_v6 = vld [vmem:[%s1814_s1 + $0xe0] sm:$0xff] }
  0x10   :  { %1002 = vmatprep.subr.bf16.mxu1 %v1001_v43  ;;  %v37_v1 = vld [vmem:[%s1814_s1 + $0x50] sm:$0xff]  ;;  %v38_v2 = vld [vmem:[%s1814_s1 + $0x58] sm:$0xff]  ;;  %v1009_v4 = vpack.c.bf16 %v86_v61, %v85_v60  ;;  %v56_v7 = vld [vmem:[%s1814_s1 + $0xe8] sm:$0xff] }
  0x11   :  { %972 = vmatpush3.bf16.msra.mxu0 %v971_v48  ;;  %v69_v3 = vld [vmem:[%s1814_s1 + $0x150] sm:$0xff]  ;;  %v70_v5 = vld [vmem:[%s1814_s1 + $0x158] sm:$0xff]  ;;  %v87_v8 = vld [vmem:[%s1814_s1 + $0x1e0] sm:$0xff]  ;;  %v979_v10 = vpack.c.bf16 %v38_v2, %v37_v1  ;;  %v981_v14 = vpack.c.bf16 %v56_v7, %v55_v6 }
  0x12   :  { %974 = vmatprep.subr.bf16.mxu0 %v973_v52  ;;  %v88_v9 = vld [vmem:[%s1814_s1 + $0x1e8] sm:$0xff]  ;;  %v39_v11 = vld [vmem:[%s1814_s1 + $0x60] sm:$0xff]  ;;  %v1011_v13 = vpack.c.bf16 %v70_v5, %v69_v3  ;;  %v57_v19 = vld [vmem:[%s1814_s1 + $0xf0] sm:$0xff] }
  0x13   :  { %1004 = vmatpush3.bf16.msra.mxu1 %v1003_v51  ;;  %v15_v12 = vld [vmem:[%s1815_s0 + $0x8] sm:$0xff]  ;;  %v71_v16 = vld [vmem:[%s1814_s1 + $0x160] sm:$0xff]  ;;  %v1013_v18 = vpack.c.bf16 %v88_v9, %v87_v8  ;;  %v58_v20 = vld [vmem:[%s1814_s1 + $0xf8] sm:$0xff] }
  0x14   :  { %1006 = vmatprep.subr.bf16.mxu1 %v1005_v56  ;;  %v40_v15 = vld [vmem:[%s1814_s1 + $0x68] sm:$0xff]  ;;  %298 = vmatprep.mubr.f32.mxu0 %v15_v12  ;;  %v17_v21 = vld [vmem:[%s1815_s0 + $0x18] sm:$0xff]  ;;  %v89_v22 = vld [vmem:[%s1814_s1 + $0x1f0] sm:$0xff]  ;;  %v985_v26 = vpack.c.bf16 %v58_v20, %v57_v19 }
  0x15   :  { %976 = vmatpush3.bf16.msra.mxu0 %v975_v62  ;;  %v72_v17 = vld [vmem:[%s1814_s1 + $0x168] sm:$0xff]  ;;  %v90_v23 = vld [vmem:[%s1814_s1 + $0x1f8] sm:$0xff]  ;;  %368 = vmatprep.mubr.f32.mxu1 %v17_v21  ;;  %v983_v24 = vpack.c.bf16 %v40_v15, %v39_v11  ;;  %v41_v27 = vld [vmem:[%s1814_s1 + $0x70] sm:$0xff] }
  0x16   :  { %978 = vmatprep.subr.bf16.mxu0 %v977_v0  ;;  %v1015_v25 = vpack.c.bf16 %v72_v17, %v71_v16  ;;  %v42_v28 = vld [vmem:[%s1814_s1 + $0x78] sm:$0xff]  ;;  %v73_v29 = vld [vmem:[%s1814_s1 + $0x170] sm:$0xff]  ;;  %v1017_v30 = vpack.c.bf16 %v90_v23, %v89_v22  ;;  %v107_v32 = vld [vmem:[%s1814_s1 + $0x280] sm:$0xff] }
  0x17   :  { %1008 = vmatpush3.bf16.msra.mxu1 %v1007_v63  ;;  %v74_v31 = vld [vmem:[%s1814_s1 + $0x178] sm:$0xff]  ;;  %v108_v33 = vld [vmem:[%s1814_s1 + $0x288] sm:$0xff]  ;;  %v139_v34 = vld [vmem:[%s1814_s1 + $0x380] sm:$0xff]  ;;  %v987_v36 = vpack.c.bf16 %v42_v28, %v41_v27 }
  0x18   :  { %1010 = vmatprep.subr.bf16.mxu1 %v1009_v4  ;;  %v140_v35 = vld [vmem:[%s1814_s1 + $0x388] sm:$0xff]  ;;  %v1019_v37 = vpack.c.bf16 %v74_v31, %v73_v29  ;;  %v1021_v38 = vpack.c.bf16 %v108_v33, %v107_v32  ;;  %v91_v39 = vld [vmem:[%s1814_s1 + $0x200] sm:$0xff]  ;;  %v109_v44 = vld [vmem:[%s1814_s1 + $0x290] sm:$0xff] }
  0x19   :  { %980 = vmatpush3.bf16.msra.mxu0 %v979_v10  ;;  %v92_v40 = vld [vmem:[%s1814_s1 + $0x208] sm:$0xff]  ;;  %v123_v41 = vld [vmem:[%s1814_s1 + $0x300] sm:$0xff]  ;;  %v1053_v42 = vpack.c.bf16 %v140_v35, %v139_v34  ;;  %v110_v45 = vld [vmem:[%s1814_s1 + $0x298] sm:$0xff] }
  0x1a   :  { %982 = vmatprep.subr.bf16.mxu0 %v981_v14  ;;  %v124_v43 = vld [vmem:[%s1814_s1 + $0x308] sm:$0xff]  ;;  %v141_v46 = vld [vmem:[%s1814_s1 + $0x390] sm:$0xff]  ;;  %v142_v47 = vld [vmem:[%s1814_s1 + $0x398] sm:$0xff]  ;;  %v1023_v49 = vpack.c.bf16 %v92_v40, %v91_v39  ;;  %v1025_v52 = vpack.c.bf16 %v110_v45, %v109_v44 }
  0x1b   :  { %1012 = vmatpush3.bf16.msra.mxu1 %v1011_v13  ;;  %v14_v48 = vld [vmem:[%s1815_s0] sm:$0xff]  ;;  %v16_v50 = vld [vmem:[%s1815_s0 + $0x10] sm:$0xff]  ;;  %v1055_v51 = vpack.c.bf16 %v124_v43, %v123_v41  ;;  %v94_v54 = vld [vmem:[%s1814_s1 + $0x218] sm:$0xff]  ;;  %v1057_v56 = vpack.c.bf16 %v142_v47, %v141_v46 }
  0x1c   :  { %1014 = vmatprep.subr.bf16.mxu1 %v1013_v18  ;;  %v93_v53 = vld [vmem:[%s1814_s1 + $0x210] sm:$0xff]  ;;  %v126_v57 = vld [vmem:[%s1814_s1 + $0x318] sm:$0xff]  ;;  %v111_v58 = vld [vmem:[%s1814_s1 + $0x2a0] sm:$0xff] }
  0x1d   :  { %984 = vmatpush3.bf16.msra.mxu0 %v983_v24  ;;  %v125_v55 = vld [vmem:[%s1814_s1 + $0x310] sm:$0xff]  ;;  %v112_v59 = vld [vmem:[%s1814_s1 + $0x2a8] sm:$0xff]  ;;  %v143_v60 = vld [vmem:[%s1814_s1 + $0x3a0] sm:$0xff]  ;;  %v1027_v62 = vpack.c.bf16 %v94_v54, %v93_v53 }
  0x1e   :  { %986 = vmatprep.subr.bf16.mxu0 %v985_v26  ;;  %v144_v61 = vld [vmem:[%s1814_s1 + $0x3a8] sm:$0xff]  ;;  %v1059_v63 = vpack.c.bf16 %v126_v57, %v125_v55  ;;  %v1029_v0 = vpack.c.bf16 %v112_v59, %v111_v58  ;;  %v95_v1 = vld [vmem:[%s1814_s1 + $0x220] sm:$0xff]  ;;  %v113_v6 = vld [vmem:[%s1814_s1 + $0x2b0] sm:$0xff] }
  0x1f   :  { %1016 = vmatpush3.bf16.msra.mxu1 %v1015_v25  ;;  %v96_v2 = vld [vmem:[%s1814_s1 + $0x228] sm:$0xff]  ;;  %v127_v3 = vld [vmem:[%s1814_s1 + $0x320] sm:$0xff]  ;;  %v1061_v4 = vpack.c.bf16 %v144_v61, %v143_v60  ;;  %v114_v7 = vld [vmem:[%s1814_s1 + $0x2b8] sm:$0xff] }
  0x20   :  { %1018 = vmatprep.subr.bf16.mxu1 %v1017_v30  ;;  %v128_v5 = vld [vmem:[%s1814_s1 + $0x328] sm:$0xff]  ;;  %v145_v8 = vld [vmem:[%s1814_s1 + $0x3b0] sm:$0xff]  ;;  %v146_v9 = vld [vmem:[%s1814_s1 + $0x3b8] sm:$0xff]  ;;  %v1031_v10 = vpack.c.bf16 %v96_v2, %v95_v1  ;;  %v1033_v12 = vpack.c.bf16 %v114_v7, %v113_v6 }
  0x21   :  { %988 = vmatpush3.bf16.msra.mxu0 %v987_v36  ;;  %v1063_v11 = vpack.c.bf16 %v128_v5, %v127_v3  ;;  %v97_v13 = vld [vmem:[%s1814_s1 + $0x230] sm:$0xff]  ;;  %v98_v14 = vld [vmem:[%s1814_s1 + $0x238] sm:$0xff]  ;;  %v1065_v16 = vpack.c.bf16 %v146_v9, %v145_v8  ;;  %v115_v18 = vld [vmem:[%s1814_s1 + $0x2c0] sm:$0xff] }
  0x22   :  { %1022 = vmatprep.subr.bf16.mxu0 %v1021_v38  ;;  %v129_v15 = vld [vmem:[%s1814_s1 + $0x330] sm:$0xff]  ;;  %v130_v17 = vld [vmem:[%s1814_s1 + $0x338] sm:$0xff]  ;;  %v116_v19 = vld [vmem:[%s1814_s1 + $0x2c8] sm:$0xff]  ;;  %v1035_v23 = vpack.c.bf16 %v98_v14, %v97_v13 }
  0x23   :  { %1020 = vmatpush3.bf16.msra.mxu1 %v1019_v37  ;;  %v147_v20 = vld [vmem:[%s1814_s1 + $0x3c0] sm:$0xff]  ;;  %v148_v21 = vld [vmem:[%s1814_s1 + $0x3c8] sm:$0xff]  ;;  %v1067_v25 = vpack.c.bf16 %v130_v17, %v129_v15  ;;  %v1037_v26 = vpack.c.bf16 %v116_v19, %v115_v18  ;;  %v21_v29 = vld [vmem:[%s1815_s0 + $0x38] sm:$0xff] }
  0x24   :  { %1054 = vmatprep.subr.bf16.mxu1 %v1053_v42  ;;  %299 = vmatmul.mubr.f32.vlgmr.msra.gmra.mrb[0].mxu0 %v14_v48  ;;  %v19_v22 = vld [vmem:[%s1815_s0 + $0x28] sm:$0xff]  ;;  %v99_v24 = vld [vmem:[%s1814_s1 + $0x240] sm:$0xff]  ;;  %v1069_v30 = vpack.c.bf16 %v148_v21, %v147_v20  ;;  %v117_v32 = vld [vmem:[%s1814_s1 + $0x2d0] sm:$0xff] }
  0x25   :  { %1024 = vmatpush3.bf16.msra.mxu0 %v1023_v49  ;;  %438 = vmatprep.mubr.f32.mxu0 %v19_v22  ;;  %v100_v27 = vld [vmem:[%s1814_s1 + $0x248] sm:$0xff]  ;;  %v131_v28 = vld [vmem:[%s1814_s1 + $0x340] sm:$0xff]  ;;  %v118_v33 = vld [vmem:[%s1814_s1 + $0x2d8] sm:$0xff] }
  0x26   :  { %369 = vmatmul.mubr.f32.vlgmr.msra.gmra.mrb[0].mxu1 %v16_v50  ;;  %1026 = vmatprep.subr.bf16.mxu0 %v1025_v52  ;;  %v132_v31 = vld [vmem:[%s1814_s1 + $0x348] sm:$0xff]  ;;  %v149_v34 = vld [vmem:[%s1814_s1 + $0x3d0] sm:$0xff]  ;;  %v150_v35 = vld [vmem:[%s1814_s1 + $0x3d8] sm:$0xff]  ;;  %v1039_v36 = vpack.c.bf16 %v100_v27, %v99_v24  ;;  %v1041_v38 = vpack.c.bf16 %v118_v33, %v117_v32 }
  0x27   :  { %1056 = vmatpush3.bf16.msra.mxu1 %v1055_v51  ;;  %508 = vmatprep.mubr.f32.mxu1 %v21_v29  ;;  %v1071_v37 = vpack.c.bf16 %v132_v31, %v131_v28  ;;  %v101_v39 = vld [vmem:[%s1814_s1 + $0x250] sm:$0xff]  ;;  %v102_v40 = vld [vmem:[%s1814_s1 + $0x258] sm:$0xff]  ;;  %v1073_v42 = vpack.c.bf16 %v150_v35, %v149_v34  ;;  %v119_v44 = vld [vmem:[%s1814_s1 + $0x2e0] sm:$0xff] }
  0x28   :  { %1058 = vmatprep.subr.bf16.mxu1 %v1057_v56  ;;  %v133_v41 = vld [vmem:[%s1814_s1 + $0x350] sm:$0xff]  ;;  %v134_v43 = vld [vmem:[%s1814_s1 + $0x358] sm:$0xff]  ;;  %v120_v45 = vld [vmem:[%s1814_s1 + $0x2e8] sm:$0xff]  ;;  %v1043_v48 = vpack.c.bf16 %v102_v40, %v101_v39 }
  0x29   :  { %1028 = vmatpush3.bf16.msra.mxu0 %v1027_v62  ;;  %v151_v46 = vld [vmem:[%s1814_s1 + $0x3e0] sm:$0xff]  ;;  %v152_v47 = vld [vmem:[%s1814_s1 + $0x3e8] sm:$0xff]  ;;  %v1075_v49 = vpack.c.bf16 %v134_v43, %v133_v41  ;;  %v1045_v50 = vpack.c.bf16 %v120_v45, %v119_v44  ;;  %v121_v56 = vld [vmem:[%s1814_s1 + $0x2f0] sm:$0xff] }
  0x2a   :  { %1030 = vmatprep.subr.bf16.mxu0 %v1029_v0  ;;  %v103_v51 = vld [vmem:[%s1814_s1 + $0x260] sm:$0xff]  ;;  %v104_v52 = vld [vmem:[%s1814_s1 + $0x268] sm:$0xff]  ;;  %v1077_v54 = vpack.c.bf16 %v152_v47, %v151_v46  ;;  %v122_v57 = vld [vmem:[%s1814_s1 + $0x2f8] sm:$0xff] }
  0x2b   :  { %1060 = vmatpush3.bf16.msra.mxu1 %v1059_v63  ;;  %v135_v53 = vld [vmem:[%s1814_s1 + $0x360] sm:$0xff]  ;;  %v136_v55 = vld [vmem:[%s1814_s1 + $0x368] sm:$0xff]  ;;  %v153_v58 = vld [vmem:[%s1814_s1 + $0x3f0] sm:$0xff]  ;;  %v1047_v60 = vpack.c.bf16 %v104_v52, %v103_v51  ;;  %v1049_v62 = vpack.c.bf16 %v122_v57, %v121_v56 }
  0x2c   :  { %1062 = vmatprep.subr.bf16.mxu1 %v1061_v4  ;;  %v154_v59 = vld [vmem:[%s1814_s1 + $0x3f8] sm:$0xff]  ;;  %v1079_v61 = vpack.c.bf16 %v136_v55, %v135_v53  ;;  %v105_v63 = vld [vmem:[%s1814_s1 + $0x270] sm:$0xff]  ;;  %v171_v4 = vld [vmem:[%s1814_s1 + $0x480] sm:$0xff] }
  0x2d   :  { %1032 = vmatpush3.bf16.msra.mxu0 %v1031_v10  ;;  %v106_v0 = vld [vmem:[%s1814_s1 + $0x278] sm:$0xff]  ;;  %v137_v1 = vld [vmem:[%s1814_s1 + $0x370] sm:$0xff]  ;;  %v1081_v2 = vpack.c.bf16 %v154_v59, %v153_v58  ;;  %v172_v5 = vld [vmem:[%s1814_s1 + $0x488] sm:$0xff] }
  0x2e   :  { %1034 = vmatprep.subr.bf16.mxu0 %v1033_v12  ;;  %v138_v3 = vld [vmem:[%s1814_s1 + $0x378] sm:$0xff]  ;;  %v203_v6 = vld [vmem:[%s1814_s1 + $0x580] sm:$0xff]  ;;  %v204_v7 = vld [vmem:[%s1814_s1 + $0x588] sm:$0xff]  ;;  %v1051_v8 = vpack.c.bf16 %v106_v0, %v105_v63  ;;  %v1085_v10 = vpack.c.bf16 %v172_v5, %v171_v4 }
  0x2f   :  { %1064 = vmatpush3.bf16.msra.mxu1 %v1063_v11  ;;  %v1083_v9 = vpack.c.bf16 %v138_v3, %v137_v1  ;;  %v155_v11 = vld [vmem:[%s1814_s1 + $0x400] sm:$0xff]  ;;  %v156_v12 = vld [vmem:[%s1814_s1 + $0x408] sm:$0xff]  ;;  %v1117_v14 = vpack.c.bf16 %v204_v7, %v203_v6  ;;  %v174_v17 = vld [vmem:[%s1814_s1 + $0x498] sm:$0xff] }
  0x30   :  { %1066 = vmatprep.subr.bf16.mxu1 %v1065_v16  ;;  %v187_v13 = vld [vmem:[%s1814_s1 + $0x500] sm:$0xff]  ;;  %v188_v15 = vld [vmem:[%s1814_s1 + $0x508] sm:$0xff]  ;;  %v173_v16 = vld [vmem:[%s1814_s1 + $0x490] sm:$0xff]  ;;  %v1087_v21 = vpack.c.bf16 %v156_v12, %v155_v11 }
  0x31   :  { %1036 = vmatpush3.bf16.msra.mxu0 %v1035_v23  ;;  %v205_v18 = vld [vmem:[%s1814_s1 + $0x590] sm:$0xff]  ;;  %v206_v19 = vld [vmem:[%s1814_s1 + $0x598] sm:$0xff]  ;;  %v18_v20 = vld [vmem:[%s1815_s0 + $0x20] sm:$0xff]  ;;  %v1119_v23 = vpack.c.bf16 %v188_v15, %v187_v13  ;;  %v1089_v24 = vpack.c.bf16 %v174_v17, %v173_v16 }
  0x32   :  { %1038 = vmatprep.subr.bf16.mxu0 %v1037_v26  ;;  %v20_v22 = vld [vmem:[%s1815_s0 + $0x30] sm:$0xff]  ;;  %v158_v26 = vld [vmem:[%s1814_s1 + $0x418] sm:$0xff]  ;;  %v1121_v28 = vpack.c.bf16 %v206_v19, %v205_v18  ;;  %v176_v31 = vld [vmem:[%s1814_s1 + $0x4a8] sm:$0xff] }
  0x33   :  { %1068 = vmatpush3.bf16.msra.mxu1 %v1067_v25  ;;  %v157_v25 = vld [vmem:[%s1814_s1 + $0x410] sm:$0xff]  ;;  %v190_v29 = vld [vmem:[%s1814_s1 + $0x518] sm:$0xff]  ;;  %v207_v32 = vld [vmem:[%s1814_s1 + $0x5a0] sm:$0xff] }
  0x34   :  { %1070 = vmatprep.subr.bf16.mxu1 %v1069_v30  ;;  %v189_v27 = vld [vmem:[%s1814_s1 + $0x510] sm:$0xff]  ;;  %v175_v30 = vld [vmem:[%s1814_s1 + $0x4a0] sm:$0xff]  ;;  %v208_v33 = vld [vmem:[%s1814_s1 + $0x5a8] sm:$0xff]  ;;  %v1091_v35 = vpack.c.bf16 %v158_v26, %v157_v25 }
  0x35   :  { %1040 = vmatpush3.bf16.msra.mxu0 %v1039_v36  ;;  %v23_v34 = vld [vmem:[%s1815_s0 + $0x48] sm:$0xff]  ;;  %v25_v36 = vld [vmem:[%s1815_s0 + $0x58] sm:$0xff]  ;;  %v159_v39 = vld [vmem:[%s1814_s1 + $0x420] sm:$0xff] }
  0x36   :  { %1042 = vmatprep.subr.bf16.mxu0 %v1041_v38  ;;  %v1093_v38 = vpack.c.bf16 %v176_v31, %v175_v30  ;;  %v160_v40 = vld [vmem:[%s1814_s1 + $0x428] sm:$0xff]  ;;  %v191_v41 = vld [vmem:[%s1814_s1 + $0x520] sm:$0xff]  ;;  %v177_v44 = vld [vmem:[%s1814_s1 + $0x4b0] sm:$0xff] }
  0x37   :  { %1072 = vmatpush3.bf16.msra.mxu1 %v1071_v37  ;;  %v1123_v37 = vpack.c.bf16 %v190_v29, %v189_v27  ;;  %v192_v43 = vld [vmem:[%s1814_s1 + $0x528] sm:$0xff]  ;;  %v178_v45 = vld [vmem:[%s1814_s1 + $0x4b8] sm:$0xff]  ;;  %v209_v46 = vld [vmem:[%s1814_s1 + $0x5b0] sm:$0xff] }
  0x38   :  { %1074 = vmatprep.subr.bf16.mxu1 %v1073_v42  ;;  %v1125_v42 = vpack.c.bf16 %v208_v33, %v207_v32  ;;  %v210_v47 = vld [vmem:[%s1814_s1 + $0x5b8] sm:$0xff]  ;;  %v161_v51 = vld [vmem:[%s1814_s1 + $0x430] sm:$0xff]  ;;  %v179_v56 = vld [vmem:[%s1814_s1 + $0x4c0] sm:$0xff] }
  0x39   :  { %1044 = vmatpush3.bf16.msra.mxu0 %v1043_v48  ;;  %v1095_v48 = vpack.c.bf16 %v160_v40, %v159_v39  ;;  %v162_v52 = vld [vmem:[%s1814_s1 + $0x438] sm:$0xff]  ;;  %v193_v53 = vld [vmem:[%s1814_s1 + $0x530] sm:$0xff]  ;;  %v180_v57 = vld [vmem:[%s1814_s1 + $0x4c8] sm:$0xff] }
  0x3a   :  { %1046 = vmatprep.subr.bf16.mxu0 %v1045_v50  ;;  %v1097_v50 = vpack.c.bf16 %v178_v45, %v177_v44  ;;  %v194_v55 = vld [vmem:[%s1814_s1 + $0x538] sm:$0xff]  ;;  %v211_v58 = vld [vmem:[%s1814_s1 + $0x5c0] sm:$0xff]  ;;  %v212_v59 = vld [vmem:[%s1814_s1 + $0x5c8] sm:$0xff] }
  0x3b   :  { %1076 = vmatpush3.bf16.msra.mxu1 %v1075_v49  ;;  %v1127_v49 = vpack.c.bf16 %v192_v43, %v191_v41  ;;  %v163_v63 = vld [vmem:[%s1814_s1 + $0x440] sm:$0xff]  ;;  %v164_v0 = vld [vmem:[%s1814_s1 + $0x448] sm:$0xff]  ;;  %v181_v4 = vld [vmem:[%s1814_s1 + $0x4d0] sm:$0xff] }
  0x3c   :  { %1078 = vmatprep.subr.bf16.mxu1 %v1077_v54  ;;  %v1129_v54 = vpack.c.bf16 %v210_v47, %v209_v46  ;;  %v195_v1 = vld [vmem:[%s1814_s1 + $0x540] sm:$0xff]  ;;  %v196_v3 = vld [vmem:[%s1814_s1 + $0x548] sm:$0xff]  ;;  %v182_v5 = vld [vmem:[%s1814_s1 + $0x4d8] sm:$0xff]  ;;  %v1158_v46 = vmov 0.0|0.0  }
  0x3d   :  { %1048 = vmatpush3.bf16.msra.mxu0 %v1047_v60  ;;  %v1099_v60 = vpack.c.bf16 %v162_v52, %v161_v51  ;;  %v213_v6 = vld [vmem:[%s1814_s1 + $0x5d0] sm:$0xff]  ;;  %v214_v7 = vld [vmem:[%s1814_s1 + $0x5d8] sm:$0xff]  ;;  %v183_v16 = vld [vmem:[%s1814_s1 + $0x4e0] sm:$0xff]  ;;  %v1160_v51 = vmov 0.0  }
  0x3e   :  { %1050 = vmatprep.subr.bf16.mxu0 %v1049_v62  ;;  %v1101_v62 = vpack.c.bf16 %v180_v57, %v179_v56  ;;  %v165_v11 = vld [vmem:[%s1814_s1 + $0x450] sm:$0xff]  ;;  %v166_v12 = vld [vmem:[%s1814_s1 + $0x458] sm:$0xff]  ;;  %v184_v17 = vld [vmem:[%s1814_s1 + $0x4e8] sm:$0xff] }
  0x3f   :  { %1080 = vmatpush3.bf16.msra.mxu1 %v1079_v61  ;;  %v1131_v61 = vpack.c.bf16 %v194_v55, %v193_v53  ;;  %v197_v13 = vld [vmem:[%s1814_s1 + $0x550] sm:$0xff]  ;;  %v198_v15 = vld [vmem:[%s1814_s1 + $0x558] sm:$0xff]  ;;  %v215_v18 = vld [vmem:[%s1814_s1 + $0x5e0] sm:$0xff] }
  0x40   :  { %1082 = vmatprep.subr.bf16.mxu1 %v1081_v2  ;;  %v1133_v2 = vpack.c.bf16 %v212_v59, %v211_v58  ;;  %v216_v19 = vld [vmem:[%s1814_s1 + $0x5e8] sm:$0xff]  ;;  %v199_v25 = vld [vmem:[%s1814_s1 + $0x560] sm:$0xff]  ;;  %v186_v29 = vld [vmem:[%s1814_s1 + $0x4f8] sm:$0xff] }
  0x41   :  { %1052 = vmatpush3.bf16.msra.mxu0 %v1051_v8  ;;  %v1103_v8 = vpack.c.bf16 %v164_v0, %v163_v63  ;;  %v1141_v26 = vpack.c.bf16 %v216_v19, %v215_v18  ;;  %v200_v27 = vld [vmem:[%s1814_s1 + $0x568] sm:$0xff]  ;;  %v217_v30 = vld [vmem:[%s1814_s1 + $0x5f0] sm:$0xff]  ;;  %v218_v31 = vld [vmem:[%s1814_s1 + $0x5f8] sm:$0xff] }
  0x42   :  { %1086 = vmatprep.subr.bf16.mxu0 %v1085_v10  ;;  %v1105_v10 = vpack.c.bf16 %v182_v5, %v181_v4  ;;  %v1143_v33 = vpack.c.bf16 %v200_v27, %v199_v25  ;;  %v202_v39 = vld [vmem:[%s1814_s1 + $0x578] sm:$0xff]  ;;  %v220_v43 = vld [vmem:[%s1814_s1 + $0x608] sm:$0xff]  ;;  %v22_v44 = vld [vmem:[%s1815_s0 + $0x40] sm:$0xff] }
  0x43   :  { %1084 = vmatpush3.bf16.msra.mxu1 %v1083_v9  ;;  %v1135_v9 = vpack.c.bf16 %v196_v3, %v195_v1  ;;  %v24_v47 = vld [vmem:[%s1815_s0 + $0x50] sm:$0xff]  ;;  %v26_v52 = vld [vmem:[%s1815_s0 + $0x60] sm:$0xff] }
  0x44   :  { %1118 = vmatprep.subr.bf16.mxu1 %v1117_v14  ;;  %439 = vmatmul.mubr.f32.vlgmr.msra.gmra.mrb[2].mxu0 %v18_v20  ;;  %v1137_v14 = vpack.c.bf16 %v214_v7, %v213_v6  ;;  %v1107_v20 = vpack.c.bf16 %v166_v12, %v165_v11 }
  0x45   :  { %1088 = vmatpush3.bf16.msra.mxu0 %v1087_v21  ;;  %578 = vmatprep.mubr.f32.mxu0 %v23_v34  ;;  %v1139_v21 = vpack.c.bf16 %v198_v15, %v197_v13 }
  0x46   :  { %509 = vmatmul.mubr.f32.vlgmr.msra.gmra.mrb[2].mxu1 %v20_v22  ;;  %1090 = vmatprep.subr.bf16.mxu0 %v1089_v24  ;;  %v1109_v22 = vpack.c.bf16 %v184_v17, %v183_v16  ;;  %v168_v24 = vld [vmem:[%s1814_s1 + $0x468] sm:$0xff] }
  0x47   :  { %1120 = vmatpush3.bf16.msra.mxu1 %v1119_v23  ;;  %648 = vmatprep.mubr.f32.mxu1 %v25_v36  ;;  %v167_v23 = vld [vmem:[%s1814_s1 + $0x460] sm:$0xff]  ;;  %v170_v36 = vld [vmem:[%s1814_s1 + $0x478] sm:$0xff] }
  0x48   :  { %1122 = vmatprep.subr.bf16.mxu1 %v1121_v28  ;;  %v185_v28 = vld [vmem:[%s1814_s1 + $0x4f0] sm:$0xff]  ;;  %v1111_v32 = vpack.c.bf16 %v168_v24, %v167_v23 }
  0x49   :  { %1092 = vmatpush3.bf16.msra.mxu0 %v1091_v35  ;;  %v1113_v34 = vpack.c.bf16 %v186_v29, %v185_v28  ;;  %v169_v35 = vld [vmem:[%s1814_s1 + $0x470] sm:$0xff] }
  0x4a   :  { %1094 = vmatprep.subr.bf16.mxu0 %v1093_v38  ;;  %v201_v38 = vld [vmem:[%s1814_s1 + $0x570] sm:$0xff]  ;;  %v1115_v40 = vpack.c.bf16 %v170_v36, %v169_v35 }
  0x4b   :  { %1124 = vmatpush3.bf16.msra.mxu1 %v1123_v37  ;;  %v1145_v37 = vpack.c.bf16 %v218_v31, %v217_v30  ;;  %v1147_v41 = vpack.c.bf16 %v202_v39, %v201_v38 }
  0x4c   :  { %1126 = vmatprep.subr.bf16.mxu1 %v1125_v42  ;;  %v219_v42 = vld [vmem:[%s1814_s1 + $0x600] sm:$0xff] }
  0x4d   :  { %1096 = vmatpush3.bf16.msra.mxu0 %v1095_v48  ;;  %v1150_v45 = vpack.c.bf16 %v220_v43, %v219_v42  ;;  %v221_v48 = vld [vmem:[%s1814_s1 + $0x610] sm:$0xff] }
  0x4e   :  { %1098 = vmatprep.subr.bf16.mxu0 %v1097_v50 }
  0x4f   :  { %1128 = vmatpush3.bf16.msra.mxu1 %v1127_v49  ;;  %v222_v49 = vld [vmem:[%s1814_s1 + $0x618] sm:$0xff] }
  0x50   :  { %1130 = vmatprep.subr.bf16.mxu1 %v1129_v54  ;;  %v1153_v50 = vpack.c.bf16 %v222_v49, %v221_v48  ;;  %v729_v54 = vld [vmem:[%s1816_s2] ss:$0 sm:$0xff] }
  0x51   :  { %1100 = vmatpush3.bf16.msra.mxu0 %v1099_v60 }
  0x52   :  { %1102 = vmatprep.subr.bf16.mxu0 %v1101_v62 }
  0x53   :  { %1132 = vmatpush3.bf16.msra.mxu1 %v1131_v61 }
  0x54   :  { %1134 = vmatprep.subr.bf16.mxu1 %v1133_v2 }
  0x55   :  { %1104 = vmatpush3.bf16.msra.mxu0 %v1103_v8 }
  0x56   :  { %1106 = vmatprep.subr.bf16.mxu0 %v1105_v10 }
  0x57   :  { %1136 = vmatpush3.bf16.msra.mxu1 %v1135_v9 }
  0x58   :  { %1138 = vmatprep.subr.bf16.mxu1 %v1137_v14 }
  0x59   :  { %1108 = vmatpush3.bf16.msra.mxu0 %v1107_v20 }
  0x5a   :  { %1110 = vmatprep.subr.bf16.mxu0 %v1109_v22 }
  0x5b   :  { %1140 = vmatpush3.bf16.msra.mxu1 %v1139_v21 }
  0x5c   :  { %1142 = vmatprep.subr.bf16.mxu1 %v1141_v26 }
  0x5d   :  { %1112 = vmatpush3.bf16.msra.mxu0 %v1111_v32 }
  0x5e   :  { %1114 = vmatprep.subr.bf16.mxu0 %v1113_v34 }
  0x5f   :  { %1144 = vmatpush3.bf16.msra.mxu1 %v1143_v33 }
  0x60   :  { %1146 = vmatprep.subr.bf16.mxu1 %v1145_v37 }
  0x61   :  { %1116 = vmatpush3.bf16.msra.mxu0 %v1115_v40 }
  0x62   :  { %1149 = vmatprep.subr.bf16.mxu0 %v1158_v46 }
  0x63   :  { %1148 = vmatpush3.bf16.msra.mxu1 %v1147_v41 }
  0x64   :  { %579 = vmatmul.mubr.f32.vlgmr.msra.gmra.mrb[4].mxu0 %v22_v44 }
  0x65   :  { %1151 = vmatpush3.bf16.msra.mxu0 %v1150_v45  ;;  %954 = vmatprep.mubr.msk.f32.mxu0 %vm1159_vm0, %v1160_v51 }
  0x66   :  { %649 = vmatmul.mubr.f32.vlgmr.msra.gmra.mrb[4].mxu1 %v24_v47  ;;  %1152 = vmatprep.subr.bf16.mxu0 %v1158_v46 }
  0x69   :  { %1154 = vmatpush3.bf16.msra.mxu0 %v1153_v50 }
  0x6c   :  { %955 = vmatmul.mubr.msk.f32.vlgmr.msra.gmra.mrb[6].mxu0 %vm230_vm1, %v26_v52 }
  0xf7   :  { %v763_v53 = vpop.f32.mrb[0].mxu0 }
  0xf8   :  { %v764_v55 = vpop.f32.mrb[1].mxu0 }
  0xf9   :  { %v798_v56 = vpop.f32.mrb[0].mxu1  ;;  %v765_v57 = vadd.f32 %v764_v55, %v763_v53 }
  0xfa   :  { %v799_v58 = vpop.f32.mrb[1].mxu1 }
  0xfb   :  { %v800_v59 = vadd.f32 %v799_v58, %v798_v56  ;;  %v301_v60 = vadd.f32 %v765_v57, %v729_v54 }
  0xfd   :  { %v371_v61 = vadd.f32 %v800_v59, %v301_v60 }
 0x117   :  { %v833_v62 = vpop.f32.mrb[2].mxu0 }
 0x118   :  { %v834_v63 = vpop.f32.mrb[3].mxu0 }
 0x119   :  { %v868_v0 = vpop.f32.mrb[2].mxu1  ;;  %v835_v1 = vadd.f32 %v834_v63, %v833_v62 }
 0x11a   :  { %v869_v2 = vpop.f32.mrb[3].mxu1 }
 0x11b   :  { %v870_v3 = vadd.f32 %v869_v2, %v868_v0  ;;  %v441_v4 = vadd.f32 %v835_v1, %v371_v61 }
 0x11d   :  { %v511_v5 = vadd.f32 %v870_v3, %v441_v4 }
 0x137   :  { %v903_v6 = vpop.f32.mrb[4].mxu0 }
 0x138   :  { %v904_v7 = vpop.f32.mrb[5].mxu0 }
 0x139   :  { %v938_v8 = vpop.f32.mrb[4].mxu1  ;;  %v905_v9 = vadd.f32 %v904_v7, %v903_v6 }
 0x13a   :  { %v939_v10 = vpop.f32.mrb[5].mxu1 }
 0x13b   :  { %v940_v11 = vadd.f32 %v939_v10, %v938_v8  ;;  %v581_v12 = vadd.f32 %v905_v9, %v511_v5 }
 0x13d   :  { %v651_v13 = vadd.f32 %v940_v11, %v581_v12 }
 0x13f   :  { %v720_v14 = vpop.f32.mrb[6].mxu0 }
 0x140   :  { %v721_v15 = vadd.f32 %v720_v14, %v651_v13  ;;  %v956_v16 = vpop.f32.mrb[7].mxu0 }
 0x142   :  { %724 = vst [vmem:[%s1817_s3] sm:$0xff] %v721_v15 }

</bundles_post_ra>
